<compile_context>
chip_gen: v6e
topology: v6e:2x2x1
jax: 0.10.0
libtpu: 0.0.40
codegen_flags: <defaults>
</compile_context>

<pallas_src>
import jax
import jax.numpy as jnp
from jax.experimental import pallas as pl
from jax.experimental.pallas import tpu as pltpu

VOCAB = 6561   # codebook entries
HID = 768      # hidden size
SPK = 192      # speaker embedding size


def _round_up(x, m):
    return (x + m - 1) // m * m


# ---------------------------------------------------------------------------
# Fuse kernel: one (TM, 768) token tile per grid step
#   out = tanh(emb + speaker_proj[b]) @ W_out + b_out
# ---------------------------------------------------------------------------
def fuse_kernel(emb_ref, spk_ref, w_ref, b_ref, out_ref):
    # emb_ref : (TM, 768)  bf16  gathered codebook rows for this tile
    # spk_ref : (B, 768)   f32   speaker projection, resident (constant index)
    # w_ref   : (768, 768) bf16  fc_output weight, resident (constant index)
    # b_ref   : (1, 768)   f32   fc_output bias, resident
    # out_ref : (TM, 768)  f32
    b = pl.program_id(0)
    spk_row = spk_ref[pl.ds(b, 1), :]                               # (1, 768) f32

    # add + tanh in f32 on VPU/EUP (v5e has no bf16 VPU/EUP path);
    # only the MXU operand is cast to bf16, accumulation stays f32.
    fused = jnp.tanh(emb_ref[...].astype(jnp.float32) + spk_row)    # (TM, 768) f32
    acc = jnp.dot(fused.astype(jnp.bfloat16), w_ref[...],
                  preferred_element_type=jnp.float32)               # (TM, 768) f32
    out_ref[...] = acc + b_ref[...]


# ---------------------------------------------------------------------------
# Module-equivalent wrapper
# ---------------------------------------------------------------------------
def cosyvoice_features(codes, speaker_embedding, params, tile_m=256):
    B, T = codes.shape

    # --- speaker path: F.normalize + Linear(192 -> 768). Tiny (~0.3 MFLOP);
    #     done in plain jnp per perf review (a pallas_call launch costs more).
    spk = speaker_embedding.astype(jnp.float32)
    norm = jnp.sqrt(jnp.sum(spk * spk, axis=1, keepdims=True))
    spk_n = spk / jnp.maximum(norm, 1e-12)                           # F.normalize(dim=1)
    spk_proj = (spk_n @ params["w_spk"].astype(jnp.float32)
                + params["b_spk"].astype(jnp.float32))               # (B, 768) f32

    # --- codebook gather with an XLA take (dense bf16 activation, OOB codes
    #     are clamped, which also addresses the unchecked-index concern).
    emb = jnp.take(params["codebook"].astype(jnp.bfloat16),
                   codes.astype(jnp.int32), axis=0)                  # (B, T, 768) bf16

    # --- token tiling: TM up to 256 (multiple of 8), pad T to a tile multiple.
    tm = min(tile_m, _round_up(T, 8))
    t_pad = _round_up(T, tm)
    if t_pad != T:
        emb = jnp.pad(emb, ((0, 0), (0, t_pad - T), (0, 0)))

    grid = (B, t_pad // tm)
    out = pl.pallas_call(
        fuse_kernel,
        out_shape=jax.ShapeDtypeStruct((B, t_pad, HID), jnp.float32),
        grid=grid,
        in_specs=[
            # gathered embeddings: one (TM, 768) tile per step (batch dim squeezed)
            pl.BlockSpec((None, tm, HID), lambda b, t: (b, t, 0)),
            # speaker projection: whole (B, 768) array resident, row picked in-kernel
            pl.BlockSpec((B, HID), lambda b, t: (0, 0)),
            # fc_output weight / bias: resident, constant block index
            pl.BlockSpec((HID, HID), lambda b, t: (0, 0)),
            pl.BlockSpec((1, HID), lambda b, t: (0, 0)),
        ],
        out_specs=pl.BlockSpec((None, tm, HID), lambda b, t: (b, t, 0)),
        compiler_params=pltpu.CompilerParams(
            dimension_semantics=("parallel", "parallel"),
        ),
    )(
        emb,
        spk_proj,
        params["w_out"].astype(jnp.bfloat16),
        params["b_out"].reshape(1, HID).astype(jnp.float32),
    )

    out = out[:, :T, :]                       # drop token padding, (B, T, 768)
    return jnp.transpose(out, (0, 2, 1))      # (B, 768, T), matches .transpose(1, 2)


# ---------------------------------------------------------------------------
# Pure-JAX reference (f32 math on the same bf16-stored weights)
# ---------------------------------------------------------------------------
def reference(codes, spk, params):
    cb = params["codebook"].astype(jnp.float32)
    w_out = params["w_out"].astype(jnp.float32)
    speech_proj = cb[codes]                                          # (B, T, 768)
    norm = jnp.sqrt(jnp.sum(spk * spk, axis=1, keepdims=True))
    spk_n = spk / jnp.maximum(norm, 1e-12)
    spk_proj = spk_n @ params["w_spk"] + params["b_spk"]             # (B, 768)
    fused = jnp.tanh(spk_proj[:, None, :] + speech_proj)             # (B, T, 768)
    out = fused @ w_out + params["b_out"]                            # (B, T, 768)
    return jnp.transpose(out, (0, 2, 1))                             # (B, 768, T)


if __name__ == "__main__":
    key = jax.random.PRNGKey(0)
    kc, ks, k1, k2, k3, k4, k5 = jax.random.split(key, 7)

    B, T = 2, 8
    codes = jax.random.randint(kc, (B, T), 0, VOCAB, dtype=jnp.int32)
    speaker_embedding = jax.random.normal(ks, (B, SPK), dtype=jnp.float32)

    # deterministic synthetic parameters (shapes from the module's __init__);
    # codebook + fc_output weight stored in bf16, small speaker weights in f32.
    params = dict(
        codebook=(jax.random.normal(k1, (VOCAB, HID), dtype=jnp.float32) * 0.02
                  ).astype(jnp.bfloat16),
        w_spk=jax.random.normal(k2, (SPK, HID), dtype=jnp.float32) * 0.02,   # (in, out)
        b_spk=jax.random.normal(k3, (HID,), dtype=jnp.float32) * 0.02,
        w_out=(jax.random.normal(k4, (HID, HID), dtype=jnp.float32) * 0.02
               ).astype(jnp.bfloat16),                                        # (in, out)
        b_out=jax.random.normal(k5, (HID,), dtype=jnp.float32) * 0.02,
    )

    out = cosyvoice_features(codes, speaker_embedding, params)
    out = jax.block_until_ready(out)

    ref = reference(codes, speaker_embedding, params)
    assert out.shape == (B, HID, T), out.shape
    assert out.dtype == jnp.float32
    # Kernel differs from the f32 reference only by the bf16 cast of the
    # matmul LHS (tanh output); accumulation is f32, so 1e-3 is comfortable.
    err = float(jnp.max(jnp.abs(out - ref)))
    assert jnp.allclose(out, ref, atol=1e-3, rtol=1e-3), err

    print("KERNEL_OK")
</pallas_src>

<mosaic_0001>
module attributes {stable_mosaic.version = 11 : i64} {
  func.func @fuse_kernel(%arg0: i32, %arg1: i32, %arg2: memref<1x8x768xbf16, #tpu.memory_space<vmem>>, %arg3: memref<2x768xf32, #tpu.memory_space<vmem>>, %arg4: memref<768x768xbf16, #tpu.memory_space<vmem>>, %arg5: memref<1x768xf32, #tpu.memory_space<vmem>>, %arg6: memref<1x8x768xf32, #tpu.memory_space<vmem>>) attributes {dimension_semantics = [#tpu.dimension_semantics<parallel>, #tpu.dimension_semantics<parallel>], iteration_bounds = array<i64: 2, 1>, scalar_prefetch = 0 : i64, scratch_operands = 0 : i64, tpu.core_type = #tpu.core_type<tc>, window_params = [{transform_indices = @transform_0, window_bounds = array<i64: 1, 8, 768>}, {pipeline_mode = #tpu.pipeline_mode<synchronous>, transform_indices = @transform_1, window_bounds = array<i64: 2, 768>}, {pipeline_mode = #tpu.pipeline_mode<synchronous>, transform_indices = @transform_2, window_bounds = array<i64: 768, 768>}, {pipeline_mode = #tpu.pipeline_mode<synchronous>, transform_indices = @transform_3, window_bounds = array<i64: 1, 768>}, {transform_indices = @transform_4, window_bounds = array<i64: 1, 8, 768>}]} {
    %0 = arith.index_cast %arg0 : i32 to index
    %c0 = arith.constant 0 : index
    %1 = vector.load %arg3[%0, %c0] : memref<2x768xf32, #tpu.memory_space<vmem>>, vector<1x768xf32>
    %c0_0 = arith.constant 0 : index
    %c0_1 = arith.constant 0 : index
    %c0_2 = arith.constant 0 : index
    %2 = vector.load %arg2[%c0_0, %c0_1, %c0_2] : memref<1x8x768xbf16, #tpu.memory_space<vmem>>, vector<1x8x768xbf16>
    %3 = vector.shape_cast %2 : vector<1x8x768xbf16> to vector<8x768xbf16>
    %4 = arith.extf %3 : vector<8x768xbf16> to vector<8x768xf32>
    %5 = vector.broadcast %1 : vector<1x768xf32> to vector<8x768xf32>
    %6 = arith.addf %4, %5 : vector<8x768xf32>
    %7 = math.tanh %6 : vector<8x768xf32>
    %8 = arith.truncf %7 : vector<8x768xf32> to vector<8x768xbf16>
    %c0_3 = arith.constant 0 : index
    %c0_4 = arith.constant 0 : index
    %9 = vector.load %arg4[%c0_3, %c0_4] : memref<768x768xbf16, #tpu.memory_space<vmem>>, vector<768x768xbf16>
    %cst = arith.constant dense<0.000000e+00> : vector<8x768xf32>
    %10 = tpu.matmul %8, %9, %cst {dimension_numbers = #tpu.dot_dimension_numbers<[1], [0], [0], [1], [0, 0, 1, 1], [], []>} : vector<8x768xbf16>, vector<768x768xbf16>, vector<8x768xf32> -> vector<8x768xf32>
    %c0_5 = arith.constant 0 : index
    %c0_6 = arith.constant 0 : index
    %11 = vector.load %arg5[%c0_5, %c0_6] : memref<1x768xf32, #tpu.memory_space<vmem>>, vector<1x768xf32>
    %12 = vector.broadcast %11 : vector<1x768xf32> to vector<8x768xf32>
    %13 = arith.addf %10, %12 : vector<8x768xf32>
    %c0_7 = arith.constant 0 : index
    %c0_8 = arith.constant 0 : index
    %c0_9 = arith.constant 0 : index
    %14 = vector.load %arg6[%c0_7, %c0_8, %c0_9] : memref<1x8x768xf32, #tpu.memory_space<vmem>>, vector<1x8x768xf32>
    %15 = vector.shape_cast %14 : vector<1x8x768xf32> to vector<8x768xf32>
    %16 = vector.shape_cast %13 : vector<8x768xf32> to vector<1x8x768xf32>
    tpu.vector_store %arg6[%c0_7, %c0_8, %c0_9], %16 {strides = array<i32>} : memref<1x8x768xf32, #tpu.memory_space<vmem>>, vector<1x8x768xf32>,
    return
  }
  func.func @transform_0(%arg0: i32, %arg1: i32) -> (i32, i32, i32) {
    %c0_i32 = arith.constant 0 : i32
    %c0_i32_0 = arith.constant 0 : i32
    return %arg0, %arg1, %c0_i32 : i32, i32, i32
  }
  func.func @transform_1(%arg0: i32, %arg1: i32) -> (i32, i32) {
    %c0_i32 = arith.constant 0 : i32
    %c0_i32_0 = arith.constant 0 : i32
    %c0_i32_1 = arith.constant 0 : i32
    return %c0_i32, %c0_i32_0 : i32, i32
  }
  func.func @transform_2(%arg0: i32, %arg1: i32) -> (i32, i32) {
    %c0_i32 = arith.constant 0 : i32
    %c0_i32_0 = arith.constant 0 : i32
    %c0_i32_1 = arith.constant 0 : i32
    return %c0_i32, %c0_i32_0 : i32, i32
  }
  func.func @transform_3(%arg0: i32, %arg1: i32) -> (i32, i32) {
    %c0_i32 = arith.constant 0 : i32
    %c0_i32_0 = arith.constant 0 : i32
    %c0_i32_1 = arith.constant 0 : i32
    return %c0_i32, %c0_i32_0 : i32, i32
  }
  func.func @transform_4(%arg0: i32, %arg1: i32) -> (i32, i32, i32) {
    %c0_i32 = arith.constant 0 : i32
    %c0_i32_0 = arith.constant 0 : i32
    return %arg0, %arg1, %c0_i32 : i32, i32, i32
  }
}

</mosaic_0001>

<bundles_post_ra>
// kernel: tpu_custom_call.1
= control target key start
LH: loop header
LB: loop body
LE: loop exit
PB: predicated region body
PF: predicated region fallthrough
CT: control target
= control target key end

     0   :  { %s3978_s0 = inlined_call_operand.hbm [shape: bf16[2,8,768], index: 0, kind: input, shape index: {}]   ;;  %s3979_s1 = inlined_call_operand.hbm [shape: f32[2,768], index: 1, kind: input, shape index: {}]   ;;  %s3980_s2 = inlined_call_operand.hbm [shape: bf16[768,768], index: 2, kind: input, shape index: {}]   ;;  %s3981_s3 = inlined_call_operand.hbm [shape: f32[1,768], index: 3, kind: input, shape index: {}]   ;;  %s3982_s4 = inlined_call_operand.hbm [shape: f32[2,8,768], index: 4, kind: output, shape index: {}]  }
   0x1   :  { %3987 = sst [smem:[#allocation15_spill]] %s3979_s1 }
   0x2   :  { %3988 = sst [smem:[#allocation16_spill]] %s3980_s2 }
   0x3   :  { %9 = vsyncpa [#allocation3], 0 }
   0x4   :  { %11 = vsyncpa [#allocation3 + $0x1], 0 }
   0x5   :  { %12 = vsyncpa [#allocation6], 0 }
   0x6   :  { %13 = vsyncpa [#allocation9], 0 }
   0x7   :  { %14 = vsyncpa [#allocation4], 0 }
   0x8   :  { %16 = vsyncpa [#allocation4 + $0x1], 0  ;;  %s3683_s15 = smov 0   ;;  %s3685_s16 = smov 0  }
   0x9   :  { %s3687_s17 = smov 0   ;;  %s3689_s18 = smov 0  }
   0xa   :  { %s3691_s19 = smov 0   ;;  %s3693_s20 = smov 0  }
   0xb LB: > { %s2607_s21 = sadd.s32 4294967295, %s3649_s20   ;;  %s2608_s22 = sadd.s32 4294967294, %s3649_s20   ;;  %s3649_s20 = sphi %s3693_s20, %s22_s20   ;;  %s3645_s19 = sphi %s3691_s19, %s4009_s19   ;;  %s3641_s18 = sphi %s3689_s18, %s4008_s18   ;;  %s3637_s17 = sphi %s3687_s17, %s4007_s17   ;;  %s3633_s16 = sphi %s3685_s16, %s4006_s16   ;;  %s3629_s15 = sphi %s3683_s15, %s4005_s15  }
   0xc   : > { %p56_p0 = scmp.ne.s32.totalorder %s3633_s16, %s3629_s15  ;;  %p3717_p1 = scmp.eq.s32.totalorder %s2607_s21, 0 }
   0xd   : > { %p3721_p2 = scmp.eq.s32.totalorder %s2607_s21, 1  ;;  %p151_p3 = scmp.eq.s32.totalorder %s2608_s22, 1 }
   0xe   : > { %s3989_s23 = scalar_select %p3717_p1, 1, 0 }
   0xf   : > { %s3990_s24 = scalar_select %p3721_p2, 1, 0 }
  0x10   : > { %p3727_p4 = por %p3717_p1, %p56_p0  ;;  %p2609_p5 = scmp.ge.s32.totalorder %s3649_s20, 1 }
  0x11   : > { %p3732_p6 = por %p151_p3, %p56_p0  ;;  %p158_p7 = scmp.lt.s32.totalorder %s3649_s20, 3 }
  0x12   : > { %s3991_s25 = scalar_select %p3727_p4, 1, 0 }
  0x13   : > { %s3992_s26 = scalar_select %p3732_p6, 1, 0 }
  0x14   : > { %p3737_p8 = pnand %p2609_p5, %p158_p7  ;;  %s3651_s28 = smov [#allocation5]  }
  0x15   : > { %s171_s29 = sshll.u32 %s3651_s28, 4  ;;  %s3652_s30 = smov [#allocation7]   ;;  %s172_s29 = int_to_ptr.vmem [resolvable:$true] %s171_s29 }
  0x16   : > { %s3993_s27 = scalar_select %p3737_p8, 1, 0 }
  0x17   : > { %p2932_p10 = pneg %p3737_p8  ;;  %s181_s5 = sshll.u32 %s3652_s30, 4  ;;  %s182_s5 = int_to_ptr.vmem [resolvable:$true] %s181_s5 }
  0x18   : > { %s3653_s7 = smov [#allocation8]   ;;  %s3466_s9 = scalar_lea.vmem %s172_s29, 192 }
  0x19   : > { %p3746_p11 = pnand %p2932_p10, %p3717_p1  ;;  %s195_s8 = sshll.u32 %s3653_s7, 4  ;;  %s196_s8 = int_to_ptr.vmem [resolvable:$true] %s195_s8 }
  0x1a   : > { %p3467_p13 = scmp.ne.s32.totalorder %s172_s29, %s3466_s9  ;;  %p3474_p5 = scmp.lt.s32.totalorder %s172_s29, %s172_s29 }
  0x1b   : > { %p3457_p12 = pneg %p3746_p11  ;;  %p3475_p7 = scmp.lt.s32.totalorder %s3466_s9, %s3466_s9 }
  0x1d   : > { %p3469_p0 = pnand %p3467_p13, %p3457_p12  ;;  %p3476_p9 = por %p3475_p7, %p3474_p5 }
  0x1f   : > { %p3470_p3 = pneg %p3469_p0 }
  0x21   : > { %p3477_p10 = pnand %p3476_p9, %p3470_p3 }
  0x23   : > { %3480 = shalt.err (!%p3477_p10)
}
  0x24   : > { %s3995_s1 = sld [smem:[#allocation15_spill]]  ;;  %s3492_s12 = scalar_lea.vmem %s182_s5, 36864 }
  0x25   : > { %p3493_p6 = scmp.ne.s32.totalorder %s182_s5, %s3492_s12  ;;  %p3500_p13 = scmp.lt.s32.totalorder %s182_s5, %s182_s5 }
  0x26   : > { %p3501_p0 = scmp.lt.s32.totalorder %s3492_s12, %s3492_s12 }
  0x27   : > { %p3495_p1 = pnand %p3493_p6, %p3457_p12 }
  0x28   : > { %p3502_p8 = por %p3501_p0, %p3500_p13 }
  0x29   : > { %p3496_p4 = pneg %p3495_p1 }
  0x2a   : > { %2935 = dma.hbm_to_vmem [thread:$0]  (!%p3746_p11), %s3995_s1, 192, %s172_s29, [#allocation6]  }
  0x2b   : > { %p3503_p2 = pnand %p3502_p8, %p3496_p4 }
  0x2d   : > { %3506 = shalt.err (!%p3503_p2)
}
  0x2e   : > { %s3654_s13 = smov 384   ;;  %s3655_s14 = smov 24  }
  0x2f   : > { %s3996_s2 = sld [smem:[#allocation16_spill]]  ;;  %s3518_s28 = scalar_lea.vmem %s196_s8, 96 }
  0x30   : > { %p3519_p9 = scmp.ne.s32.totalorder %s196_s8, %s3518_s28  ;;  %p3526_p3 = scmp.lt.s32.totalorder %s196_s8, %s196_s8 }
  0x31   : > { %p3527_p5 = scmp.lt.s32.totalorder %s3518_s28, %s3518_s28 }
  0x32   : > { %p3521_p1 = pnand %p3519_p9, %p3457_p12 }
  0x33   : > { %p3528_p4 = por %p3527_p5, %p3526_p3 }
  0x34   : > { %p3522_p6 = pneg %p3521_p1 }
  0x35   : > { %2938 = dma.hbm_to_vmem [thread:$0]  (!%p3746_p11), %s3996_s2, 36864, %s182_s5, [#allocation6], %s3654_s13, %s3654_s13, %s3655_s14  }
  0x36   : > { %p3529_p2 = pnand %p3528_p4, %p3522_p6 }
  0x38   : > { %3532 = shalt.err (!%p3529_p2)
}
  0x39   : > { %2941 = dma.hbm_to_vmem [thread:$0]  (!%p3746_p11), %s3981_s3, 96, %s196_s8, [#allocation9]  }
  0x3a   : > { %s43_s5 = sadd.s32 1, %s3637_s17  ;;  %s34_s7 = sadd.s32 1, %s3645_s19 }
  0x3b   : > { %p50_p8 = scmp.ne.s32.totalorder %s3637_s17, %s3633_s16  ;;  %p36_p12 = scmp.ge.s32.totalorder %s34_s7, 2 }
  0x3c   : > { %p51_p7 = scmp.eq.s32.totalorder %s3649_s20, 0  ;;  %p3997_p10 = scmp.ne.s32.totalorder %s3990_s24, 0 }
  0x3d   : > { %p2953_p0 = scmp.lt.s32.totalorder %s3649_s20, 2  ;;  %s4011_s7 = smov (%p36_p12, %s34_s7), 0 }
  0x3e   : > { %p3783_p13 = por %p3997_p10, %p50_p8  ;;  %p52_p9 = por %p51_p7, %p50_p8 }
  0x3f   : > { %s206_s9 = sand.u32 1, %s3637_s17   ;;  %s38_s10 = ssub.s32 %s3645_s19, %s4011_s7 }
  0x40   : > { %p41_p1 = scmp.eq.s32.totalorder %s38_s10, 0  ;;  %s2911_s8 = smul.u32 24, %s206_s9 }
  0x41   : > { %s2912_s11 = smul.u32 384, %s3645_s19  ;;  %p3794_p11 = pnand %p2953_p0, %p52_p9 }
  0x42   : > { %s3799_s24 = scalar_select %p41_p1, %s3637_s17, %s43_s5  }
  0x43   : > { %s218_s21 = scalar_lea.hbm %s3978_s0, %s2912_s11  ;;  %s210_s22 = scalar_lea.vmem [#allocation2], %s2911_s8 }
  0x44   : > { %s220_s28 = sshll.u32 %s210_s22, 4  ;;  %s207_s29 = scalar_lea.sflag [#allocation3], %s206_s9  ;;  %s221_s28 = int_to_ptr.vmem [resolvable:$true] %s220_s28 }
  0x45   : > { %p3535_p6 = pneg %p3794_p11  ;;  %s3546_s30 = scalar_lea.vmem %s221_s28, 384 }
  0x46   : > { %p3547_p3 = scmp.ne.s32.totalorder %s221_s28, %s3546_s30  ;;  %s3656_s10 = smov [#allocation2]  }
  0x47   : > { %s3551_s1 = sshll.u32 %s3656_s10, 4  ;;  %s3552_s1 = int_to_ptr.vmem [resolvable:$false] %s3551_s1 }
  0x48   : > { %p3549_p5 = pnand %p3547_p3, %p3535_p6  ;;  %s3553_s2 = scalar_lea.vmem %s3552_s1, 768 }
  0x49   : > { %p3554_p2 = scmp.lt.s32.totalorder %s221_s28, %s3552_s1  ;;  %p3555_p8 = scmp.lt.s32.totalorder %s3553_s2, %s3546_s30 }
  0x4a   : > { %p3550_p4 = pneg %p3549_p5 }
  0x4b   : > { %p3556_p12 = por %p3555_p8, %p3554_p2 }
  0x4d   : > { %p3557_p7 = pnand %p3556_p12, %p3550_p4 }
  0x4f   : > { %3560 = shalt.err (!%p3557_p7)
}
  0x50   : > { %2945 = dma.hbm_to_vmem [thread:$0]  (!%p3794_p11), %s218_s21, 384, %s221_s28, %s207_s29  }
  0x51   : > { %p4000_p10 = scmp.ne.s32.totalorder %s3993_s27, 0 }
  0x52   : > { %s3811_s5 = sand.u32 (!%p4000_p10), 1, %s3633_s16   ;;  %p4001_p0 = scmp.ne.s32.totalorder (!%p4000_p10), %s3991_s25, 0 }
  0x53   : > { %229 = sbr.rel (%p4000_p10) target bundleno = 626 (0x272), region = 36  ;;  %s232_s8 = scalar_lea.sflag (!%p4000_p10), [#allocation3], %s3811_s5 }
  0x54   : > { %s2913_s9 = smul.u32 (!%p4000_p10), 24, %s3811_s5 }
  0x56   : > { %s3815_s11 = scalar_lea.vmem (!%p4000_p10), [#allocation2], %s2913_s9 }
  0x58   : > { %3612 = dma.done.wait (%p4001_p0), %s232_s8, 384  }
  0x59   : > { %3614 = vsyncadd (%p4001_p0), %s232_s8, 4294966912  ;;  %p4002_p9 = scmp.ne.s32.totalorder %s3989_s23, 0 }
  0x5b   : > { %3616 = dma.done.wait (%p4002_p9), [#allocation6], 37056  }
  0x5c   : > { %3618 = vsyncadd (%p4002_p9), [#allocation6], 4294930240 }
  0x5d   : > { %3620 = dma.done.wait (%p4002_p9), [#allocation9], 96  }
  0x5e   : > { %3622 = vsyncadd (%p4002_p9), [#allocation9], 4294967200  ;;  %v3011_v0 = vld [vmem:[#allocation7 + $0x154] ss:$24 sps:$4 sm:$0xff]   ;;  %v3013_v1 = vld [vmem:[#allocation7 + $0x150] ss:$24 sps:$4 sm:$0xff]   ;;  %v291_v35 = vlaneseq }
  0x5f   : > { %2099 = vmatprep.subr.bf16.mxu0 %v3011_v0  ;;  %v3014_v2 = vld [vmem:[#allocation7 + $0x454] ss:$24 sps:$4 sm:$0xff]   ;;  %v3016_v3 = vld [vmem:[#allocation7 + $0x450] ss:$24 sps:$4 sm:$0xff]   ;;  %v3017_v4 = vld [vmem:[#allocation7 + $0x124] ss:$24 sps:$4 sm:$0xff]  }
  0x60   : > { %2100 = vmatpush1.bf16.msra.mxu0 %v3013_v1  ;;  %v3019_v5 = vld [vmem:[#allocation7 + $0x120] ss:$24 sps:$4 sm:$0xff]   ;;  %2140 = vmatprep.subr.bf16.mxu1 %v3014_v2  ;;  %v3020_v6 = vld [vmem:[#allocation7 + $0x424] ss:$24 sps:$4 sm:$0xff]   ;;  %v3023_v8 = vld [vmem:[#allocation7 + $0xf4] ss:$24 sps:$4 sm:$0xff]  }
  0x61   : > { %2141 = vmatpush1.bf16.msra.mxu1 %v3016_v3  ;;  %2101 = vmatprep.subr.bf16.mxu0 %v3017_v4  ;;  %v3022_v7 = vld [vmem:[#allocation7 + $0x420] ss:$24 sps:$4 sm:$0xff]   ;;  %v3025_v9 = vld [vmem:[#allocation7 + $0xf0] ss:$24 sps:$4 sm:$0xff]   ;;  %v3026_v10 = vld [vmem:[#allocation7 + $0x3f4] ss:$24 sps:$4 sm:$0xff]  }
  0x62   : > { %2142 = vmatprep.subr.bf16.mxu1 %v3020_v6  ;;  %v3029_v11 = vld [vmem:[#allocation7 + $0xc4] ss:$24 sps:$4 sm:$0xff]   ;;  %v3028_v12 = vld [vmem:[#allocation7 + $0x3f0] ss:$24 sps:$4 sm:$0xff]   ;;  %v3031_v14 = vld [vmem:[#allocation7 + $0xc0] ss:$24 sps:$4 sm:$0xff]  }
  0x63   : > { %v3032_v13 = vld [vmem:[#allocation7 + $0x3c4] ss:$24 sps:$4 sm:$0xff]   ;;  %v3035_v15 = vld [vmem:[#allocation7 + $0x94] ss:$24 sps:$4 sm:$0xff]   ;;  %v3034_v16 = vld [vmem:[#allocation7 + $0x3c0] ss:$24 sps:$4 sm:$0xff]  }
  0x64   : > { %2102 = vmatpush1.bf16.msra.mxu0 %v3019_v5  ;;  %v3038_v17 = vld [vmem:[#allocation7 + $0x394] ss:$24 sps:$4 sm:$0xff]   ;;  %v3037_v18 = vld [vmem:[#allocation7 + $0x90] ss:$24 sps:$4 sm:$0xff]   ;;  %v3041_v19 = vld [vmem:[#allocation7 + $0x64] ss:$24 sps:$4 sm:$0xff]  }
  0x65   : > { %2103 = vmatprep.subr.bf16.mxu0 %v3023_v8  ;;  %2143 = vmatpush1.bf16.msra.mxu1 %v3022_v7  ;;  %v3040_v20 = vld [vmem:[#allocation7 + $0x390] ss:$24 sps:$4 sm:$0xff]   ;;  %v3044_v21 = vld [vmem:[#allocation7 + $0x364] ss:$24 sps:$4 sm:$0xff]   ;;  %v3043_v22 = vld [vmem:[#allocation7 + $0x60] ss:$24 sps:$4 sm:$0xff]  }
  0x66   : > { %2144 = vmatprep.subr.bf16.mxu1 %v3026_v10  ;;  %v3047_v23 = vld [vmem:[#allocation7 + $0x34] ss:$24 sps:$4 sm:$0xff]   ;;  %v3046_v24 = vld [vmem:[#allocation7 + $0x360] ss:$24 sps:$4 sm:$0xff]   ;;  %v3049_v26 = vld [vmem:[#allocation7 + $0x30] ss:$24 sps:$4 sm:$0xff]  }
  0x67   : > { %v3050_v25 = vld [vmem:[#allocation7 + $0x334] ss:$24 sps:$4 sm:$0xff]   ;;  %v3053_v27 = vld [vmem:[#allocation7 + $0x4] ss:$24 sps:$4 sm:$0xff]   ;;  %v3052_v28 = vld [vmem:[#allocation7 + $0x330] ss:$24 sps:$4 sm:$0xff]  }
  0x68   : > { %2104 = vmatpush1.bf16.msra.mxu0 %v3025_v9  ;;  %v3056_v29 = vld [vmem:[#allocation7 + $0x304] ss:$24 sps:$4 sm:$0xff]   ;;  %v3055_v30 = vld [vmem:[#allocation7] ss:$24 sps:$4 sm:$0xff]   ;;  %v3059_v31 = vld [vmem:[#allocation7 + $0x2d4] ss:$24 sps:$4 sm:$0xff]  }
  0x69   : > { %2105 = vmatprep.subr.bf16.mxu0 %v3029_v11  ;;  %2145 = vmatpush1.bf16.msra.mxu1 %v3028_v12  ;;  %v3058_v32 = vld [vmem:[#allocation7 + $0x300] ss:$24 sps:$4 sm:$0xff]   ;;  %s272_s1 = sshra.s32 %s3641_s18, 1  ;;  %v3062_v33 = vld [vmem:[#allocation7 + $0x5d4] ss:$24 sps:$4 sm:$0xff]   ;;  %s275_s23 = sand.u32 1, %s3641_s18 }
  0x6a   : > { %2146 = vmatprep.subr.bf16.mxu1 %v3032_v13  ;;  %v3061_v34 = vld [vmem:[#allocation7 + $0x2d0] ss:$24 sps:$4 sm:$0xff]   ;;  %v3065_v36 = vld [vmem:[#allocation7 + $0x2a4] ss:$24 sps:$4 sm:$0xff]   ;;  %s2619_s2 = smul.u32 12, %s272_s1  ;;  %v3831_v40 = vshrl.u32 %v291_v35, 7 }
  0x6b   : > { %v3064_v37 = vld [vmem:[#allocation7 + $0x5d0] ss:$24 sps:$4 sm:$0xff]   ;;  %v3068_v38 = vld [vmem:[#allocation7 + $0x5a4] ss:$24 sps:$4 sm:$0xff]   ;;  %v3067_v39 = vld [vmem:[#allocation7 + $0x2a0] ss:$24 sps:$4 sm:$0xff]  }
  0x6c   : > { %2106 = vmatpush1.bf16.msra.mxu0 %v3031_v14  ;;  %v3071_v41 = vld [vmem:[#allocation7 + $0x274] ss:$24 sps:$4 sm:$0xff]   ;;  %s278_s25 = sadd.s32 %s2619_s2, %s275_s23  ;;  %v3070_v42 = vld [vmem:[#allocation7 + $0x5a0] ss:$24 sps:$4 sm:$0xff]   ;;  %v3073_v44 = vld [vmem:[#allocation7 + $0x270] ss:$24 sps:$4 sm:$0xff]  }
  0x6d   : > { %2107 = vmatprep.subr.bf16.mxu0 %v3035_v15  ;;  %2147 = vmatpush1.bf16.msra.mxu1 %v3034_v16  ;;  %v3074_v43 = vld [vmem:[#allocation7 + $0x574] ss:$24 sps:$4 sm:$0xff]   ;;  %v297_v45 = vsub.s32 1, %v3831_v40  ;;  %v293_v46 = vsub.s32 0, %v3831_v40  ;;  %v3077_v47 = vld [vmem:[#allocation7 + $0x244] ss:$24 sps:$4 sm:$0xff]  }
  0x6e   : > { %2148 = vmatprep.subr.bf16.mxu1 %v3038_v17  ;;  %v305_v48 = vsub.s32 3, %v3831_v40  ;;  %v301_v49 = vsub.s32 2, %v3831_v40  ;;  %v3076_v50 = vld [vmem:[#allocation7 + $0x570] ss:$24 sps:$4 sm:$0xff]   ;;  %v3080_v51 = vld [vmem:[#allocation7 + $0x544] ss:$24 sps:$4 sm:$0xff]  }
  0x6f   : > { %s279_s27 = scalar_lea.vmem [#allocation5], %s278_s25  ;;  %v281_v53 = vld [vmem:[%s3815_s11] sm:$0xff]  ;;  %v3083_v59 = vld [vmem:[#allocation7 + $0x214] ss:$24 sps:$4 sm:$0xff]   ;;  %s2914_s12 = smul.u32 48, %s3811_s5 }
  0x70   : > { %2108 = vmatpush1.bf16.msra.mxu0 %v3037_v18  ;;  %v3837_v52 = vld [vmem:[%s279_s27] ss:$2 sm:$0x3f]  ;;  %v3079_v54 = vld [vmem:[#allocation7 + $0x240] ss:$24 sps:$4 sm:$0xff]   ;;  %v285_v55 = vunpack.c.h.bf16 %v281_v53  ;;  %v284_v57 = vunpack.c.l.bf16 %v281_v53  ;;  %s2915_s14 = smul.u32 768, %s3641_s18 }
  0x71   : > { %2109 = vmatprep.subr.bf16.mxu0 %v3041_v19  ;;  %2149 = vmatpush1.bf16.msra.mxu1 %v3040_v20  ;;  %v298_v56 = vrot.slane %v3837_v52, %v297_v45  ;;  %v294_v58 = vrot.slane %v3837_v52, %v293_v46  ;;  %v282_v60 = vld [vmem:[%s3815_s11 + $0x8] sm:$0xff]  ;;  %v306_v61 = vrot.slane %v3837_v52, %v305_v48  ;;  %v3082_v63 = vld [vmem:[#allocation7 + $0x540] ss:$24 sps:$4 sm:$0xff]   ;;  %s3909_s13 = scalar_lea.vmem [#allocation10], %s2914_s12  ;;  %s2475_s18 = scalar_lea.sflag [#allocation4], %s3811_s5 }
  0x72   : > { %2150 = vmatprep.subr.bf16.mxu1 %v3044_v21  ;;  %v302_v62 = vrot.slane %v3837_v52, %v301_v49  ;;  %v287_v2 = vunpack.c.h.bf16 %v282_v60  ;;  %v286_v3 = vunpack.c.l.bf16 %v282_v60  ;;  %v3086_v4 = vld [vmem:[#allocation7 + $0x514] ss:$24 sps:$4 sm:$0xff]   ;;  %v3085_v5 = vld [vmem:[#allocation7 + $0x210] ss:$24 sps:$4 sm:$0xff]   ;;  %v3089_v8 = vld [vmem:[#allocation7 + $0x1e4] ss:$24 sps:$4 sm:$0xff]   ;;  %s3929_s29 = scalar_lea.hbm %s3982_s4, %s2915_s14 }
  0x73   : > { %v322_v0 = vadd.f32 %v298_v56, %v285_v55  ;;  %v321_v1 = vadd.f32 %v294_v58, %v284_v57  ;;  %v3088_v9 = vld [vmem:[#allocation7 + $0x510] ss:$24 sps:$4 sm:$0xff]   ;;  %v3092_v10 = vld [vmem:[#allocation7 + $0x4e4] ss:$24 sps:$4 sm:$0xff]   ;;  %v3091_v11 = vld [vmem:[#allocation7 + $0x1e0] ss:$24 sps:$4 sm:$0xff]  }
  0x74   : > { %2110 = vmatpush1.bf16.msra.mxu0 %v3043_v22  ;;  %v324_v6 = vadd.f32 %v306_v61, %v287_v2  ;;  %v323_v7 = vadd.f32 %v302_v62, %v286_v3  ;;  %v3095_v12 = vld [vmem:[#allocation7 + $0x1b4] ss:$24 sps:$4 sm:$0xff]   ;;  %v3094_v13 = vld [vmem:[#allocation7 + $0x4e0] ss:$24 sps:$4 sm:$0xff]   ;;  %v3097_v15 = vld [vmem:[#allocation7 + $0x1b0] ss:$24 sps:$4 sm:$0xff]  }
  0x75   : > { %2111 = vmatprep.subr.bf16.mxu0 %v3047_v23  ;;  %2151 = vmatpush1.bf16.msra.mxu1 %v3046_v24  ;;  %3443 = vtanh.f32 %v322_v0  ;;  %v3098_v14 = vld [vmem:[#allocation7 + $0x4b4] ss:$24 sps:$4 sm:$0xff]   ;;  %v3101_v16 = vld [vmem:[#allocation7 + $0x184] ss:$24 sps:$4 sm:$0xff]   ;;  %v3100_v17 = vld [vmem:[#allocation7 + $0x4b0] ss:$24 sps:$4 sm:$0xff]  }
  0x76   : > { %2152 = vmatprep.subr.bf16.mxu1 %v3050_v25  ;;  %3445 = vtanh.f32 %v321_v1  ;;  %v3104_v18 = vld [vmem:[#allocation7 + $0x484] ss:$24 sps:$4 sm:$0xff]   ;;  %v3103_v19 = vld [vmem:[#allocation7 + $0x180] ss:$24 sps:$4 sm:$0xff]   ;;  %v3109_v21 = vld [vmem:[#allocation7 + $0x754] ss:$24 sps:$4 sm:$0xff]  }
  0x77   : > { %3447 = vtanh.f32 %v324_v6  ;;  %v3106_v24 = vld [vmem:[#allocation7 + $0x480] ss:$24 sps:$4 sm:$0xff]   ;;  %v3131_v53 = vld [vmem:[#allocation7 + $0x690] ss:$24 sps:$4 sm:$0xff]   ;;  %v313_v56 = vsub.s32 5, %v3831_v40  ;;  %s2491_s21 = sshll.u32 %s3909_s13, 4  ;;  %s3931_s21 = int_to_ptr.vmem [resolvable:$true] %s2491_s21 }
  0x78   : > { %2112 = vmatpush1.bf16.msra.mxu0 %v3049_v26  ;;  %3449 = vtanh.f32 %v323_v7  ;;  %v3113_v35 = vld [vmem:[#allocation7 + $0x720] ss:$24 sps:$4 sm:$0xff]   ;;  %v3142_v57 = vld [vmem:[#allocation7 + $0x6c] ss:$24 sps:$4 sm:$0xff]   ;;  %v3148_v62 = vld [vmem:[#allocation7 + $0x3c] ss:$24 sps:$4 sm:$0xff]  }
  0x79   : > { %2113 = vmatprep.subr.bf16.mxu0 %v3053_v27  ;;  %2153 = vmatpush1.bf16.msra.mxu1 %v3052_v28  ;;  %v3112_v27 = vld [vmem:[#allocation7 + $0x15c] ss:$24 sps:$4 sm:$0xff]   ;;  %v3134_v55 = vld [vmem:[#allocation7 + $0x98] ss:$24 sps:$4 sm:$0xff]   ;;  %v3140_v60 = vld [vmem:[#allocation7 + $0x68] ss:$24 sps:$4 sm:$0xff]   ;;  %v314_v61 = vrot.slane %v3837_v52, %v313_v56 }
  0x7a   : > { %2154 = vmatprep.subr.bf16.mxu1 %v3056_v29  ;;  %v3107_v29 = vld [vmem:[#allocation7 + $0x750] ss:$24 sps:$4 sm:$0xff]   ;;  %v3137_v58 = vld [vmem:[#allocation7 + $0x660] ss:$24 sps:$4 sm:$0xff]   ;;  %v3151_v2 = vld [vmem:[#allocation7 + $0x604] ss:$24 sps:$4 sm:$0xff]  }
  0x7b   : > { %v3143_v0 = vld [vmem:[#allocation7 + $0x630] ss:$24 sps:$4 sm:$0xff]   ;;  %v3149_v6 = vld [vmem:[#allocation7 + $0x600] ss:$24 sps:$4 sm:$0xff]   ;;  %v3157_v7 = vld [vmem:[#allocation7 + $0x8d4] ss:$24 sps:$4 sm:$0xff]  }
  0x7c   : > { %2114 = vmatpush1.bf16.msra.mxu0 %v3055_v30  ;;  %v3146_v3 = vld [vmem:[#allocation7 + $0x38] ss:$24 sps:$4 sm:$0xff]   ;;  %s3561_s30 = scalar_lea.vmem %s3931_s21, 768  ;;  %s3657_s10 = smov [#allocation10]  }
  0x7d   : > { %2115 = vmatprep.subr.bf16.mxu0 %v3059_v31  ;;  %2155 = vmatpush1.bf16.msra.mxu1 %v3058_v32  ;;  %v3115_v32 = vld [vmem:[#allocation7 + $0x724] ss:$24 sps:$4 sm:$0xff]   ;;  %p3562_p1 = scmp.ne.s32.totalorder %s3931_s21, %s3561_s30  ;;  %s3565_s9 = sshll.u32 %s3657_s10, 4  ;;  %s3566_s9 = int_to_ptr.vmem [resolvable:$false] %s3565_s9 }
  0x7e   : > { %2156 = vmatprep.subr.bf16.mxu1 %v3062_v33  ;;  %v3110_v33 = vld [vmem:[#allocation7 + $0x158] ss:$24 sps:$4 sm:$0xff]   ;;  %s3567_s8 = scalar_lea.vmem %s3566_s9, 1536  ;;  %p3568_p3 = scmp.lt.s32.totalorder %s3931_s21, %s3566_s9 }
  0x7f   : > { %p3563_p11 = pnand %p3562_p1, %p3783_p13  ;;  %p3569_p5 = scmp.lt.s32.totalorder %s3567_s8, %s3561_s30 }
  0x80   : > { %2116 = vmatpush2.bf16.msra.mxu0 %v3061_v34  ;;  %v3118_v34 = vld [vmem:[#allocation7 + $0x12c] ss:$24 sps:$4 sm:$0xff]  }
  0x81   : > { %2117 = vmatprep.subr.bf16.mxu0 %v3065_v36  ;;  %2157 = vmatpush2.bf16.msra.mxu1 %v3064_v37  ;;  %v3121_v36 = vld [vmem:[#allocation7 + $0x6f4] ss:$24 sps:$4 sm:$0xff]   ;;  %v3116_v37 = vld [vmem:[#allocation7 + $0x128] ss:$24 sps:$4 sm:$0xff]   ;;  %p3564_p6 = pneg %p3563_p11  ;;  %p3570_p4 = por %p3569_p5, %p3568_p3 }
  0x82   : > { %2158 = vmatprep.subr.bf16.mxu1 %v3068_v38  ;;  %v3444_v20 = vpop.eup %3443  ;;  %v3124_v38 = vld [vmem:[#allocation7 + $0xfc] ss:$24 sps:$4 sm:$0xff]  }
  0x83   : > { %v3446_v22 = vpop.eup %3445  ;;  %v3853_v23 = vpack.c.bf16 %v3444_v20, %v3444_v20  ;;  %p3571_p2 = pnand %p3570_p4, %p3564_p6 }
  0x84   : > { %2118 = vmatpush2.bf16.msra.mxu0 %v3067_v39  ;;  %v3448_v25 = vpop.eup %3447  ;;  %v3855_v26 = vpack.c.bf16 %v3446_v22, %v3446_v22  ;;  %v3119_v39 = vld [vmem:[#allocation7 + $0x6f0] ss:$24 sps:$4 sm:$0xff]  }
  0x85   : > { %2119 = vmatprep.subr.bf16.mxu0 %v3071_v41  ;;  %2159 = vmatpush2.bf16.msra.mxu1 %v3070_v42  ;;  %v3450_v28 = vpop.eup %3449  ;;  %v3858_v30 = vpack.c.bf16 %v3448_v25, %v3448_v25  ;;  %v3127_v41 = vld [vmem:[#allocation7 + $0x6c4] ss:$24 sps:$4 sm:$0xff]   ;;  %v3122_v42 = vld [vmem:[#allocation7 + $0xf8] ss:$24 sps:$4 sm:$0xff]  }
  0x86   : > { %2160 = vmatprep.subr.bf16.mxu1 %v3074_v43  ;;  %2131 = vmatprep.mubr.bf16.mxu0 %v3853_v23  ;;  %v3860_v31 = vpack.c.bf16 %v3450_v28, %v3450_v28  ;;  %v3130_v43 = vld [vmem:[#allocation7 + $0xcc] ss:$24 sps:$4 sm:$0xff]   ;;  %v3170_v25 = vld [vmem:[#allocation7 + $0x278] ss:$24 sps:$4 sm:$0xff]  }
  0x87   : > { %2172 = vmatprep.mubr.bf16.mxu1 %v3858_v30  ;;  %v3178_v28 = vld [vmem:[#allocation7 + $0x24c] ss:$24 sps:$4 sm:$0xff]  }
  0x88   : > { %2120 = vmatpush2.bf16.msra.mxu0 %v3073_v44  ;;  %v3125_v44 = vld [vmem:[#allocation7 + $0x6c0] ss:$24 sps:$4 sm:$0xff]  }
  0x89   : > { %2121 = vmatprep.subr.bf16.mxu0 %v3077_v47  ;;  %2161 = vmatpush2.bf16.msra.mxu1 %v3076_v50  ;;  %v3133_v47 = vld [vmem:[#allocation7 + $0x694] ss:$24 sps:$4 sm:$0xff]   ;;  %v3128_v50 = vld [vmem:[#allocation7 + $0xc8] ss:$24 sps:$4 sm:$0xff]  }
  0x8a   : > { %2162 = vmatprep.subr.bf16.mxu1 %v3080_v51  ;;  %v3136_v51 = vld [vmem:[#allocation7 + $0x9c] ss:$24 sps:$4 sm:$0xff]  }
  0x8c   : > { %2122 = vmatpush2.bf16.msra.mxu0 %v3079_v54  ;;  %v3139_v54 = vld [vmem:[#allocation7 + $0x664] ss:$24 sps:$4 sm:$0xff]  }
  0x8d   : > { %2123 = vmatprep.subr.bf16.mxu0 %v3083_v59  ;;  %2163 = vmatpush2.bf16.msra.mxu1 %v3082_v63  ;;  %v3145_v59 = vld [vmem:[#allocation7 + $0x634] ss:$24 sps:$4 sm:$0xff]  }
  0x8e   : > { %2164 = vmatprep.subr.bf16.mxu1 %v3086_v4  ;;  %v283_v63 = vld [vmem:[%s3815_s11 + $0x10] sm:$0xff] }
  0x8f   : > { %v289_v1 = vunpack.c.h.bf16 %v283_v63 }
  0x90   : > { %2124 = vmatpush2.bf16.msra.mxu0 %v3085_v5  ;;  %v3154_v5 = vld [vmem:[#allocation7 + $0xc] ss:$24 sps:$4 sm:$0xff]  }
  0x91   : > { %2125 = vmatprep.subr.bf16.mxu0 %v3089_v8  ;;  %2165 = vmatpush2.bf16.msra.mxu1 %v3088_v9  ;;  %v326_v4 = vadd.f32 %v314_v61, %v289_v1  ;;  %v3152_v8 = vld [vmem:[#allocation7 + $0x8] ss:$24 sps:$4 sm:$0xff]   ;;  %v3160_v9 = vld [vmem:[#allocation7 + $0x2dc] ss:$24 sps:$4 sm:$0xff]   ;;  %v3211_v61 = vld [vmem:[#allocation7 + $0x42c] ss:$24 sps:$4 sm:$0xff]  }
  0x92   : > { %2166 = vmatprep.subr.bf16.mxu1 %v3092_v10  ;;  %v3155_v10 = vld [vmem:[#allocation7 + $0x8d0] ss:$24 sps:$4 sm:$0xff]   ;;  %v3217_v1 = vld [vmem:[#allocation7 + $0x3fc] ss:$24 sps:$4 sm:$0xff]  }
  0x93   : > { %3451 = vtanh.f32 %v326_v4  ;;  %v3215_v4 = vld [vmem:[#allocation7 + $0x3f8] ss:$24 sps:$4 sm:$0xff]  }
  0x94   : > { %2126 = vmatpush2.bf16.msra.mxu0 %v3091_v11  ;;  %v3163_v11 = vld [vmem:[#allocation7 + $0x8a4] ss:$24 sps:$4 sm:$0xff]  }
  0x95   : > { %2127 = vmatprep.subr.bf16.mxu0 %v3095_v12  ;;  %2167 = vmatpush2.bf16.msra.mxu1 %v3094_v13  ;;  %v3158_v12 = vld [vmem:[#allocation7 + $0x2d8] ss:$24 sps:$4 sm:$0xff]   ;;  %v3166_v13 = vld [vmem:[#allocation7 + $0x2ac] ss:$24 sps:$4 sm:$0xff]  }
  0x96   : > { %2168 = vmatprep.subr.bf16.mxu1 %v3098_v14  ;;  %v309_v14 = vsub.s32 4, %v3831_v40 }
  0x98   : > { %2128 = vmatpush2.bf16.msra.mxu0 %v3097_v15  ;;  %v3161_v15 = vld [vmem:[#allocation7 + $0x8a0] ss:$24 sps:$4 sm:$0xff]   ;;  %v310_v20 = vrot.slane %v3837_v52, %v309_v14 }
  0x99   : > { %2129 = vmatprep.subr.bf16.mxu0 %v3101_v16  ;;  %2169 = vmatpush2.bf16.msra.mxu1 %v3100_v17  ;;  %v3169_v16 = vld [vmem:[#allocation7 + $0x874] ss:$24 sps:$4 sm:$0xff]   ;;  %v3164_v17 = vld [vmem:[#allocation7 + $0x2a8] ss:$24 sps:$4 sm:$0xff]  }
  0x9a   : > { %2170 = vmatprep.subr.bf16.mxu1 %v3104_v18  ;;  %v3172_v18 = vld [vmem:[#allocation7 + $0x27c] ss:$24 sps:$4 sm:$0xff]   ;;  %v3176_v52 = vld [vmem:[#allocation7 + $0x248] ss:$24 sps:$4 sm:$0xff]  }
  0x9c   : > { %2130 = vmatpush2.bf16.msra.mxu0 %v3103_v19  ;;  %v288_v19 = vunpack.c.l.bf16 %v283_v63  ;;  %v3214_v63 = vld [vmem:[#allocation7 + $0x72c] ss:$24 sps:$4 sm:$0xff]  }
  0x9d   : > { %2181 = vmatprep.subr.bf16.mxu0 %v3109_v21  ;;  %2171 = vmatpush2.bf16.msra.mxu1 %v3106_v24  ;;  %v3167_v21 = vld [vmem:[#allocation7 + $0x870] ss:$24 sps:$4 sm:$0xff]   ;;  %v3175_v24 = vld [vmem:[#allocation7 + $0x844] ss:$24 sps:$4 sm:$0xff]  }
  0x9e   : > { %2222 = vmatprep.subr.bf16.mxu1 %v3112_v27 }
  0x9f   : > { %2132 = vmatmul.mubr.bf16.vlgmr.msra.gmra.mxu0 %v3855_v26 }
  0xa0   : > { %2182 = vmatpush1.bf16.msra.mxu0 %v3107_v29  ;;  %2173 = vmatmul.mubr.bf16.vlgmr.msra.gmra.mxu1 %v3860_v31  ;;  %v3452_v22 = vpop.eup %3451  ;;  %v325_v29 = vadd.f32 %v310_v20, %v288_v19  ;;  %v3236_v19 = vld [vmem:[#allocation7 + $0x668] ss:$24 sps:$4 sm:$0xff]   ;;  %v3244_v20 = vld [vmem:[#allocation7 + $0x63c] ss:$24 sps:$4 sm:$0xff]  }
  0xa1   : > { %2183 = vmatprep.subr.bf16.mxu0 %v3115_v32  ;;  %2223 = vmatpush1.bf16.msra.mxu1 %v3110_v33  ;;  %v3875_v27 = vpack.c.bf16 %v3452_v22, %v3452_v22  ;;  %v3173_v32 = vld [vmem:[#allocation7 + $0x840] ss:$24 sps:$4 sm:$0xff]   ;;  %v3181_v33 = vld [vmem:[#allocation7 + $0x814] ss:$24 sps:$4 sm:$0xff]  }
  0xa2   : > { %2254 = vmatprep.mubr.bf16.mxu1 %v3853_v23  ;;  %2224 = vmatprep.subr.bf16.mxu1 %v3118_v34  ;;  %v3184_v34 = vld [vmem:[#allocation7 + $0x21c] ss:$24 sps:$4 sm:$0xff]   ;;  %3453 = vtanh.f32 %v325_v29  ;;  %v3247_v22 = vld [vmem:[#allocation7 + $0x30c] ss:$24 sps:$4 sm:$0xff]  }
  0xa3   : > { %2213 = vmatprep.mubr.bf16.mxu0 %v3875_v27  ;;  %v3253_v29 = vld [vmem:[#allocation7 + $0x5dc] ss:$24 sps:$4 sm:$0xff]  }
  0xa4   : > { %2184 = vmatpush1.bf16.msra.mxu0 %v3113_v35  ;;  %v3179_v35 = vld [vmem:[#allocation7 + $0x810] ss:$24 sps:$4 sm:$0xff]  }
  0xa5   : > { %2185 = vmatprep.subr.bf16.mxu0 %v3121_v36  ;;  %2225 = vmatpush1.bf16.msra.mxu1 %v3116_v37  ;;  %v3187_v36 = vld [vmem:[#allocation7 + $0x7e4] ss:$24 sps:$4 sm:$0xff]   ;;  %v3182_v37 = vld [vmem:[#allocation7 + $0x218] ss:$24 sps:$4 sm:$0xff]  }
  0xa6   : > { %2226 = vmatprep.subr.bf16.mxu1 %v3124_v38  ;;  %v3190_v38 = vld [vmem:[#allocation7 + $0x1ec] ss:$24 sps:$4 sm:$0xff]  }
  0xa8   : > { %2186 = vmatpush1.bf16.msra.mxu0 %v3119_v39  ;;  %v3185_v39 = vld [vmem:[#allocation7 + $0x7e0] ss:$24 sps:$4 sm:$0xff]  }
  0xa9   : > { %2187 = vmatprep.subr.bf16.mxu0 %v3127_v41  ;;  %2227 = vmatpush1.bf16.msra.mxu1 %v3122_v42  ;;  %v3193_v41 = vld [vmem:[#allocation7 + $0x7b4] ss:$24 sps:$4 sm:$0xff]   ;;  %v3188_v42 = vld [vmem:[#allocation7 + $0x1e8] ss:$24 sps:$4 sm:$0xff]  }
  0xaa   : > { %2228 = vmatprep.subr.bf16.mxu1 %v3130_v43  ;;  %v3196_v43 = vld [vmem:[#allocation7 + $0x1bc] ss:$24 sps:$4 sm:$0xff]  }
  0xac   : > { %2188 = vmatpush1.bf16.msra.mxu0 %v3125_v44  ;;  %v3191_v44 = vld [vmem:[#allocation7 + $0x7b0] ss:$24 sps:$4 sm:$0xff]  }
  0xad   : > { %2189 = vmatprep.subr.bf16.mxu0 %v3133_v47  ;;  %2229 = vmatpush1.bf16.msra.mxu1 %v3128_v50  ;;  %v3199_v47 = vld [vmem:[#allocation7 + $0x784] ss:$24 sps:$4 sm:$0xff]   ;;  %v3194_v50 = vld [vmem:[#allocation7 + $0x1b8] ss:$24 sps:$4 sm:$0xff]  }
  0xae   : > { %2230 = vmatprep.subr.bf16.mxu1 %v3136_v51  ;;  %v3202_v51 = vld [vmem:[#allocation7 + $0x18c] ss:$24 sps:$4 sm:$0xff]  }
  0xb0   : > { %2190 = vmatpush1.bf16.msra.mxu0 %v3131_v53  ;;  %v3454_v53 = vpop.eup %3453 }
  0xb1   : > { %2191 = vmatprep.subr.bf16.mxu0 %v3139_v54  ;;  %2231 = vmatpush1.bf16.msra.mxu1 %v3134_v55  ;;  %v3197_v54 = vld [vmem:[#allocation7 + $0x780] ss:$24 sps:$4 sm:$0xff]   ;;  %v3205_v55 = vld [vmem:[#allocation7 + $0x45c] ss:$24 sps:$4 sm:$0xff]  }
  0xb2   : > { %2232 = vmatprep.subr.bf16.mxu1 %v3142_v57  ;;  %v3200_v57 = vld [vmem:[#allocation7 + $0x188] ss:$24 sps:$4 sm:$0xff]  }
  0xb4   : > { %2192 = vmatpush1.bf16.msra.mxu0 %v3137_v58  ;;  %v3878_v58 = vpack.c.bf16 %v3454_v53, %v3454_v53  ;;  %v3272_v53 = vld [vmem:[#allocation7 + $0x848] ss:$24 sps:$4 sm:$0xff]  }
  0xb5   : > { %2193 = vmatprep.subr.bf16.mxu0 %v3145_v59  ;;  %2233 = vmatpush1.bf16.msra.mxu1 %v3140_v60  ;;  %v3208_v59 = vld [vmem:[#allocation7 + $0x75c] ss:$24 sps:$4 sm:$0xff]   ;;  %v3203_v60 = vld [vmem:[#allocation7 + $0x458] ss:$24 sps:$4 sm:$0xff]  }
  0xb6   : > { %2234 = vmatprep.subr.bf16.mxu1 %v3148_v62  ;;  %v3206_v62 = vld [vmem:[#allocation7 + $0x758] ss:$24 sps:$4 sm:$0xff]  }
  0xb8   : > { %2194 = vmatpush1.bf16.msra.mxu0 %v3143_v0  ;;  %v3209_v0 = vld [vmem:[#allocation7 + $0x428] ss:$24 sps:$4 sm:$0xff]  }
  0xb9   : > { %2195 = vmatprep.subr.bf16.mxu0 %v3151_v2  ;;  %2235 = vmatpush1.bf16.msra.mxu1 %v3146_v3  ;;  %v3212_v2 = vld [vmem:[#allocation7 + $0x728] ss:$24 sps:$4 sm:$0xff]   ;;  %v3220_v3 = vld [vmem:[#allocation7 + $0x6fc] ss:$24 sps:$4 sm:$0xff]  }
  0xba   : > { %2236 = vmatprep.subr.bf16.mxu1 %v3154_v5  ;;  %v3223_v5 = vld [vmem:[#allocation7 + $0x3cc] ss:$24 sps:$4 sm:$0xff]  }
  0xbc   : > { %2196 = vmatpush1.bf16.msra.mxu0 %v3149_v6  ;;  %v3218_v6 = vld [vmem:[#allocation7 + $0x6f8] ss:$24 sps:$4 sm:$0xff]  }
  0xbd   : > { %2197 = vmatprep.subr.bf16.mxu0 %v3157_v7  ;;  %2237 = vmatpush1.bf16.msra.mxu1 %v3152_v8  ;;  %v3226_v7 = vld [vmem:[#allocation7 + $0x6cc] ss:$24 sps:$4 sm:$0xff]   ;;  %v3221_v8 = vld [vmem:[#allocation7 + $0x3c8] ss:$24 sps:$4 sm:$0xff]  }
  0xbe   : > { %2238 = vmatprep.subr.bf16.mxu1 %v3160_v9  ;;  %v3229_v9 = vld [vmem:[#allocation7 + $0x39c] ss:$24 sps:$4 sm:$0xff]  }
  0xc0   : > { %2198 = vmatpush2.bf16.msra.mxu0 %v3155_v10  ;;  %v3224_v10 = vld [vmem:[#allocation7 + $0x6c8] ss:$24 sps:$4 sm:$0xff]  }
  0xc1   : > { %2199 = vmatprep.subr.bf16.mxu0 %v3163_v11  ;;  %2239 = vmatpush2.bf16.msra.mxu1 %v3158_v12  ;;  %v3232_v11 = vld [vmem:[#allocation7 + $0x69c] ss:$24 sps:$4 sm:$0xff]   ;;  %v3227_v12 = vld [vmem:[#allocation7 + $0x398] ss:$24 sps:$4 sm:$0xff]  }
  0xc2   : > { %2240 = vmatprep.subr.bf16.mxu1 %v3166_v13  ;;  %v3235_v13 = vld [vmem:[#allocation7 + $0x36c] ss:$24 sps:$4 sm:$0xff]  }
  0xc4   : > { %2200 = vmatpush2.bf16.msra.mxu0 %v3161_v15  ;;  %v3230_v15 = vld [vmem:[#allocation7 + $0x698] ss:$24 sps:$4 sm:$0xff]  }
  0xc5   : > { %2201 = vmatprep.subr.bf16.mxu0 %v3169_v16  ;;  %2241 = vmatpush2.bf16.msra.mxu1 %v3164_v17  ;;  %v3238_v16 = vld [vmem:[#allocation7 + $0x66c] ss:$24 sps:$4 sm:$0xff]   ;;  %v3233_v17 = vld [vmem:[#allocation7 + $0x368] ss:$24 sps:$4 sm:$0xff]  }
  0xc6   : > { %2242 = vmatprep.subr.bf16.mxu1 %v3172_v18  ;;  %v3241_v18 = vld [vmem:[#allocation7 + $0x33c] ss:$24 sps:$4 sm:$0xff]  }
  0xc8   : > { %2202 = vmatpush2.bf16.msra.mxu0 %v3167_v21  ;;  %v3239_v21 = vld [vmem:[#allocation7 + $0x338] ss:$24 sps:$4 sm:$0xff]  }
  0xc9   : > { %2203 = vmatprep.subr.bf16.mxu0 %v3175_v24  ;;  %2243 = vmatpush2.bf16.msra.mxu1 %v3170_v25  ;;  %v3242_v24 = vld [vmem:[#allocation7 + $0x638] ss:$24 sps:$4 sm:$0xff]   ;;  %v3250_v25 = vld [vmem:[#allocation7 + $0x60c] ss:$24 sps:$4 sm:$0xff]  }
  0xca   : > { %2244 = vmatprep.subr.bf16.mxu1 %v3178_v28  ;;  %v3245_v28 = vld [vmem:[#allocation7 + $0x308] ss:$24 sps:$4 sm:$0xff]  }
  0xcc   : > { %2204 = vmatpush2.bf16.msra.mxu0 %v3173_v32  ;;  %v3248_v32 = vld [vmem:[#allocation7 + $0x608] ss:$24 sps:$4 sm:$0xff]  }
  0xcd   : > { %2205 = vmatprep.subr.bf16.mxu0 %v3181_v33  ;;  %2245 = vmatpush2.bf16.msra.mxu1 %v3176_v52  ;;  %v3256_v33 = vld [vmem:[#allocation7 + $0x8dc] ss:$24 sps:$4 sm:$0xff]   ;;  %v3251_v52 = vld [vmem:[#allocation7 + $0x5d8] ss:$24 sps:$4 sm:$0xff]  }
  0xce   : > { %2246 = vmatprep.subr.bf16.mxu1 %v3184_v34  ;;  %v3259_v34 = vld [vmem:[#allocation7 + $0x5ac] ss:$24 sps:$4 sm:$0xff]  }
  0xd0   : > { %2206 = vmatpush2.bf16.msra.mxu0 %v3179_v35  ;;  %v3254_v35 = vld [vmem:[#allocation7 + $0x8d8] ss:$24 sps:$4 sm:$0xff]  }
  0xd1   : > { %2207 = vmatprep.subr.bf16.mxu0 %v3187_v36  ;;  %2247 = vmatpush2.bf16.msra.mxu1 %v3182_v37  ;;  %v3262_v36 = vld [vmem:[#allocation7 + $0x8ac] ss:$24 sps:$4 sm:$0xff]   ;;  %v3257_v37 = vld [vmem:[#allocation7 + $0x5a8] ss:$24 sps:$4 sm:$0xff]  }
  0xd2   : > { %2248 = vmatprep.subr.bf16.mxu1 %v3190_v38  ;;  %v3265_v38 = vld [vmem:[#allocation7 + $0x57c] ss:$24 sps:$4 sm:$0xff]  }
  0xd4   : > { %2208 = vmatpush2.bf16.msra.mxu0 %v3185_v39  ;;  %v3260_v39 = vld [vmem:[#allocation7 + $0x8a8] ss:$24 sps:$4 sm:$0xff]  }
  0xd5   : > { %2209 = vmatprep.subr.bf16.mxu0 %v3193_v41  ;;  %2249 = vmatpush2.bf16.msra.mxu1 %v3188_v42  ;;  %v3268_v41 = vld [vmem:[#allocation7 + $0x87c] ss:$24 sps:$4 sm:$0xff]   ;;  %v3263_v42 = vld [vmem:[#allocation7 + $0x578] ss:$24 sps:$4 sm:$0xff]  }
  0xd6   : > { %2250 = vmatprep.subr.bf16.mxu1 %v3196_v43  ;;  %v3271_v43 = vld [vmem:[#allocation7 + $0x54c] ss:$24 sps:$4 sm:$0xff]  }
  0xd8   : > { %2210 = vmatpush2.bf16.msra.mxu0 %v3191_v44  ;;  %v3266_v44 = vld [vmem:[#allocation7 + $0x878] ss:$24 sps:$4 sm:$0xff]  }
  0xd9   : > { %2211 = vmatprep.subr.bf16.mxu0 %v3199_v47  ;;  %2251 = vmatpush2.bf16.msra.mxu1 %v3194_v50  ;;  %v3274_v47 = vld [vmem:[#allocation7 + $0x84c] ss:$24 sps:$4 sm:$0xff]   ;;  %v3269_v50 = vld [vmem:[#allocation7 + $0x548] ss:$24 sps:$4 sm:$0xff]  }
  0xda   : > { %2252 = vmatprep.subr.bf16.mxu1 %v3202_v51  ;;  %v3277_v51 = vld [vmem:[#allocation7 + $0x51c] ss:$24 sps:$4 sm:$0xff]  }
  0xdc   : > { %2212 = vmatpush2.bf16.msra.mxu0 %v3197_v54  ;;  %v3280_v54 = vld [vmem:[#allocation7 + $0x81c] ss:$24 sps:$4 sm:$0xff]  }
  0xdd   : > { %2263 = vmatprep.subr.bf16.mxu0 %v3205_v55  ;;  %2253 = vmatpush2.bf16.msra.mxu1 %v3200_v57  ;;  %v3275_v55 = vld [vmem:[#allocation7 + $0x518] ss:$24 sps:$4 sm:$0xff]   ;;  %v3283_v57 = vld [vmem:[#allocation7 + $0x4ec] ss:$24 sps:$4 sm:$0xff]  }
  0xde   : > { %2304 = vmatprep.subr.bf16.mxu1 %v3208_v59  ;;  %v3278_v59 = vld [vmem:[#allocation7 + $0x818] ss:$24 sps:$4 sm:$0xff]  }
  0xdf   : > { %2214 = vmatmul.mubr.bf16.vlgmr.msra.gmra.mxu0 %v3878_v58 }
  0xe0   : > { %2264 = vmatpush1.bf16.msra.mxu0 %v3203_v60  ;;  %2295 = vmatprep.mubr.bf16.mxu0 %v3858_v30  ;;  %v3286_v60 = vld [vmem:[#allocation7 + $0x7ec] ss:$24 sps:$4 sm:$0xff]  }
  0xe1   : > { %2255 = vmatmul.mubr.bf16.vlgmr.msra.gmra.mxu1 %v3855_v26  ;;  %2265 = vmatprep.subr.bf16.mxu0 %v3211_v61  ;;  %v3281_v61 = vld [vmem:[#allocation7 + $0x4e8] ss:$24 sps:$4 sm:$0xff]  }
  0xe2   : > { %2305 = vmatpush1.bf16.msra.mxu1 %v3206_v62  ;;  %2336 = vmatprep.mubr.bf16.mxu1 %v3875_v27  ;;  %v3289_v62 = vld [vmem:[#allocation7 + $0x4bc] ss:$24 sps:$4 sm:$0xff]  }
  0xe3   : > { %2306 = vmatprep.subr.bf16.mxu1 %v3214_v63  ;;  %v3284_v63 = vld [vmem:[#allocation7 + $0x7e8] ss:$24 sps:$4 sm:$0xff]  }
  0xe4   : > { %2266 = vmatpush1.bf16.msra.mxu0 %v3209_v0  ;;  %v3292_v0 = vld [vmem:[#allocation7 + $0x7bc] ss:$24 sps:$4 sm:$0xff]  }
  0xe5   : > { %2267 = vmatprep.subr.bf16.mxu0 %v3217_v1  ;;  %v3287_v1 = vld [vmem:[#allocation7 + $0x4b8] ss:$24 sps:$4 sm:$0xff]  }
  0xe6   : > { %2307 = vmatpush1.bf16.msra.mxu1 %v3212_v2  ;;  %v3295_v2 = vld [vmem:[#allocation7 + $0x48c] ss:$24 sps:$4 sm:$0xff]  }
  0xe7   : > { %2308 = vmatprep.subr.bf16.mxu1 %v3220_v3  ;;  %v3290_v3 = vld [vmem:[#allocation7 + $0x7b8] ss:$24 sps:$4 sm:$0xff]  }
  0xe8   : > { %2268 = vmatpush1.bf16.msra.mxu0 %v3215_v4  ;;  %v3298_v4 = vld [vmem:[#allocation7 + $0x78c] ss:$24 sps:$4 sm:$0xff]  }
  0xe9   : > { %2269 = vmatprep.subr.bf16.mxu0 %v3223_v5  ;;  %v3293_v5 = vld [vmem:[#allocation7 + $0x488] ss:$24 sps:$4 sm:$0xff]  }
  0xea   : > { %2309 = vmatpush1.bf16.msra.mxu1 %v3218_v6  ;;  %v3301_v6 = vld [vmem:[#allocation7 + $0x164] ss:$24 sps:$4 sm:$0xff]  }
  0xeb   : > { %2310 = vmatprep.subr.bf16.mxu1 %v3226_v7  ;;  %v3296_v7 = vld [vmem:[#allocation7 + $0x788] ss:$24 sps:$4 sm:$0xff]  }
  0xec   : > { %2270 = vmatpush1.bf16.msra.mxu0 %v3221_v8  ;;  %v3304_v8 = vld [vmem:[#allocation7 + $0x464] ss:$24 sps:$4 sm:$0xff]  }
  0xed   : > { %2271 = vmatprep.subr.bf16.mxu0 %v3229_v9  ;;  %v3299_v9 = vld [vmem:[#allocation7 + $0x160] ss:$24 sps:$4 sm:$0xff]  }
  0xee   : > { %2311 = vmatpush1.bf16.msra.mxu1 %v3224_v10  ;;  %v3307_v10 = vld [vmem:[#allocation7 + $0x134] ss:$24 sps:$4 sm:$0xff]  }
  0xef   : > { %2312 = vmatprep.subr.bf16.mxu1 %v3232_v11  ;;  %v3302_v11 = vld [vmem:[#allocation7 + $0x460] ss:$24 sps:$4 sm:$0xff]  }
  0xf0   : > { %2272 = vmatpush1.bf16.msra.mxu0 %v3227_v12  ;;  %v3310_v12 = vld [vmem:[#allocation7 + $0x434] ss:$24 sps:$4 sm:$0xff]  }
  0xf1   : > { %2273 = vmatprep.subr.bf16.mxu0 %v3235_v13  ;;  %v3305_v13 = vld [vmem:[#allocation7 + $0x130] ss:$24 sps:$4 sm:$0xff]  }
  0xf2   : > { %2313 = vmatpush1.bf16.msra.mxu1 %v3230_v15  ;;  %v3313_v15 = vld [vmem:[#allocation7 + $0x104] ss:$24 sps:$4 sm:$0xff]  }
  0xf3   : > { %2314 = vmatprep.subr.bf16.mxu1 %v3238_v16  ;;  %v3308_v16 = vld [vmem:[#allocation7 + $0x430] ss:$24 sps:$4 sm:$0xff]  }
  0xf4   : > { %2274 = vmatpush1.bf16.msra.mxu0 %v3233_v17  ;;  %v3316_v17 = vld [vmem:[#allocation7 + $0x404] ss:$24 sps:$4 sm:$0xff]  }
  0xf5   : > { %2275 = vmatprep.subr.bf16.mxu0 %v3241_v18  ;;  %v3311_v18 = vld [vmem:[#allocation7 + $0x100] ss:$24 sps:$4 sm:$0xff]  }
  0xf6   : > { %2315 = vmatpush1.bf16.msra.mxu1 %v3236_v19  ;;  %v3319_v19 = vld [vmem:[#allocation7 + $0xd4] ss:$24 sps:$4 sm:$0xff]  }
  0xf7   : > { %2316 = vmatprep.subr.bf16.mxu1 %v3244_v20  ;;  %v3314_v20 = vld [vmem:[#allocation7 + $0x400] ss:$24 sps:$4 sm:$0xff]  }
  0xf8   : > { %2276 = vmatpush1.bf16.msra.mxu0 %v3239_v21  ;;  %v3322_v21 = vld [vmem:[#allocation7 + $0x3d4] ss:$24 sps:$4 sm:$0xff]  }
  0xf9   : > { %2277 = vmatprep.subr.bf16.mxu0 %v3247_v22  ;;  %v3325_v22 = vld [vmem:[#allocation7 + $0xa4] ss:$24 sps:$4 sm:$0xff]  }
  0xfa   : > { %2317 = vmatpush1.bf16.msra.mxu1 %v3242_v24  ;;  %v3320_v24 = vld [vmem:[#allocation7 + $0x3d0] ss:$24 sps:$4 sm:$0xff]  }
  0xfb   : > { %2318 = vmatprep.subr.bf16.mxu1 %v3250_v25  ;;  %v3328_v25 = vld [vmem:[#allocation7 + $0x3a4] ss:$24 sps:$4 sm:$0xff]  }
  0xfc   : > { %2278 = vmatpush1.bf16.msra.mxu0 %v3245_v28  ;;  %v3331_v28 = vld [vmem:[#allocation7 + $0x74] ss:$24 sps:$4 sm:$0xff]  }
  0xfd   : > { %2279 = vmatprep.subr.bf16.mxu0 %v3253_v29  ;;  %v3326_v29 = vld [vmem:[#allocation7 + $0x3a0] ss:$24 sps:$4 sm:$0xff]  }
  0xfe   : > { %2319 = vmatpush1.bf16.msra.mxu1 %v3248_v32  ;;  %v3334_v32 = vld [vmem:[#allocation7 + $0x374] ss:$24 sps:$4 sm:$0xff]  }
  0xff   : > { %2320 = vmatprep.subr.bf16.mxu1 %v3256_v33  ;;  %v3329_v33 = vld [vmem:[#allocation7 + $0x70] ss:$24 sps:$4 sm:$0xff]  }
 0x100   : > { %2280 = vmatpush2.bf16.msra.mxu0 %v3251_v52  ;;  %v3337_v52 = vld [vmem:[#allocation7 + $0x44] ss:$24 sps:$4 sm:$0xff]  }
 0x101   : > { %2281 = vmatprep.subr.bf16.mxu0 %v3259_v34  ;;  %v3332_v34 = vld [vmem:[#allocation7 + $0x370] ss:$24 sps:$4 sm:$0xff]  }
 0x102   : > { %2321 = vmatpush2.bf16.msra.mxu1 %v3254_v35  ;;  %v3340_v35 = vld [vmem:[#allocation7 + $0x344] ss:$24 sps:$4 sm:$0xff]  }
 0x103   : > { %2322 = vmatprep.subr.bf16.mxu1 %v3262_v36  ;;  %v3335_v36 = vld [vmem:[#allocation7 + $0x40] ss:$24 sps:$4 sm:$0xff]  }
 0x104   : > { %2282 = vmatpush2.bf16.msra.mxu0 %v3257_v37  ;;  %v3343_v37 = vld [vmem:[#allocation7 + $0x14] ss:$24 sps:$4 sm:$0xff]  }
 0x105   : > { %2283 = vmatprep.subr.bf16.mxu0 %v3265_v38  ;;  %v3338_v38 = vld [vmem:[#allocation7 + $0x340] ss:$24 sps:$4 sm:$0xff]  }
 0x106   : > { %2323 = vmatpush2.bf16.msra.mxu1 %v3260_v39  ;;  %v3346_v39 = vld [vmem:[#allocation7 + $0x314] ss:$24 sps:$4 sm:$0xff]  }
 0x107   : > { %2324 = vmatprep.subr.bf16.mxu1 %v3268_v41  ;;  %v3341_v41 = vld [vmem:[#allocation7 + $0x10] ss:$24 sps:$4 sm:$0xff]  }
 0x108   : > { %2284 = vmatpush2.bf16.msra.mxu0 %v3263_v42  ;;  %v3349_v42 = vld [vmem:[#allocation7 + $0x2e4] ss:$24 sps:$4 sm:$0xff]  }
 0x109   : > { %2285 = vmatprep.subr.bf16.mxu0 %v3271_v43  ;;  %v3344_v43 = vld [vmem:[#allocation7 + $0x310] ss:$24 sps:$4 sm:$0xff]  }
 0x10a   : > { %2325 = vmatpush2.bf16.msra.mxu1 %v3266_v44  ;;  %v3352_v44 = vld [vmem:[#allocation7 + $0x5e4] ss:$24 sps:$4 sm:$0xff]  }
 0x10b   : > { %2326 = vmatprep.subr.bf16.mxu1 %v3274_v47  ;;  %v3347_v47 = vld [vmem:[#allocation7 + $0x2e0] ss:$24 sps:$4 sm:$0xff]  }
 0x10c   : > { %2286 = vmatpush2.bf16.msra.mxu0 %v3269_v50  ;;  %v3355_v50 = vld [vmem:[#allocation7 + $0x2b4] ss:$24 sps:$4 sm:$0xff]  }
 0x10d   : > { %2287 = vmatprep.subr.bf16.mxu0 %v3277_v51  ;;  %v3350_v51 = vld [vmem:[#allocation7 + $0x5e0] ss:$24 sps:$4 sm:$0xff]  }
 0x10e   : > { %2327 = vmatpush2.bf16.msra.mxu1 %v3272_v53  ;;  %v3358_v53 = vld [vmem:[#allocation7 + $0x5b4] ss:$24 sps:$4 sm:$0xff]  }
 0x10f   : > { %2328 = vmatprep.subr.bf16.mxu1 %v3280_v54  ;;  %v3353_v54 = vld [vmem:[#allocation7 + $0x2b0] ss:$24 sps:$4 sm:$0xff]  }
 0x110   : > { %2288 = vmatpush2.bf16.msra.mxu0 %v3275_v55  ;;  %v3361_v55 = vld [vmem:[#allocation7 + $0x284] ss:$24 sps:$4 sm:$0xff]  }
 0x111   : > { %2289 = vmatprep.subr.bf16.mxu0 %v3283_v57  ;;  %v3356_v57 = vld [vmem:[#allocation7 + $0x5b0] ss:$24 sps:$4 sm:$0xff]  }
 0x112   : > { %2329 = vmatpush2.bf16.msra.mxu1 %v3278_v59  ;;  %v3364_v59 = vld [vmem:[#allocation7 + $0x584] ss:$24 sps:$4 sm:$0xff]  }
 0x113   : > { %2330 = vmatprep.subr.bf16.mxu1 %v3286_v60  ;;  %v3359_v60 = vld [vmem:[#allocation7 + $0x280] ss:$24 sps:$4 sm:$0xff]  }
 0x114   : > { %2290 = vmatpush2.bf16.msra.mxu0 %v3281_v61  ;;  %v3367_v61 = vld [vmem:[#allocation7 + $0x254] ss:$24 sps:$4 sm:$0xff]  }
 0x115   : > { %2291 = vmatprep.subr.bf16.mxu0 %v3289_v62  ;;  %v3362_v62 = vld [vmem:[#allocation7 + $0x580] ss:$24 sps:$4 sm:$0xff]  }
 0x116   : > { %2331 = vmatpush2.bf16.msra.mxu1 %v3284_v63  ;;  %v3370_v63 = vld [vmem:[#allocation7 + $0x554] ss:$24 sps:$4 sm:$0xff]  }
 0x117   : > { %2332 = vmatprep.subr.bf16.mxu1 %v3292_v0  ;;  %v3365_v0 = vld [vmem:[#allocation7 + $0x250] ss:$24 sps:$4 sm:$0xff]  }
 0x118   : > { %2292 = vmatpush2.bf16.msra.mxu0 %v3287_v1  ;;  %v3373_v1 = vld [vmem:[#allocation7 + $0x224] ss:$24 sps:$4 sm:$0xff]  }
 0x119   : > { %2293 = vmatprep.subr.bf16.mxu0 %v3295_v2  ;;  %v3368_v2 = vld [vmem:[#allocation7 + $0x550] ss:$24 sps:$4 sm:$0xff]  }
 0x11a   : > { %2333 = vmatpush2.bf16.msra.mxu1 %v3290_v3  ;;  %v3376_v3 = vld [vmem:[#allocation7 + $0x524] ss:$24 sps:$4 sm:$0xff]  }
 0x11b   : > { %2334 = vmatprep.subr.bf16.mxu1 %v3298_v4  ;;  %v3371_v4 = vld [vmem:[#allocation7 + $0x220] ss:$24 sps:$4 sm:$0xff]  }
 0x11c   : > { %2294 = vmatpush2.bf16.msra.mxu0 %v3293_v5  ;;  %v3379_v5 = vld [vmem:[#allocation7 + $0x1f4] ss:$24 sps:$4 sm:$0xff]  }
 0x11d   : > { %2345 = vmatprep.subr.bf16.mxu0 %v3301_v6  ;;  %v3374_v6 = vld [vmem:[#allocation7 + $0x520] ss:$24 sps:$4 sm:$0xff]  }
 0x11e   : > { %2335 = vmatpush2.bf16.msra.mxu1 %v3296_v7  ;;  %v3382_v7 = vld [vmem:[#allocation7 + $0x4f4] ss:$24 sps:$4 sm:$0xff]  }
 0x11f   : > { %2296 = vmatmul.mubr.bf16.vlgmr.msra.gmra.mxu0 %v3860_v31  ;;  %2386 = vmatprep.subr.bf16.mxu1 %v3304_v8  ;;  %v3377_v8 = vld [vmem:[#allocation7 + $0x1f0] ss:$24 sps:$4 sm:$0xff]  }
 0x120   : > { %2346 = vmatpush1.bf16.msra.mxu0 %v3299_v9  ;;  %2377 = vmatprep.mubr.bf16.mxu0 %v3853_v23  ;;  %v3317_v23 = vld [vmem:[#allocation7 + $0xd0] ss:$24 sps:$4 sm:$0xff]   ;;  %v3385_v9 = vld [vmem:[#allocation7 + $0x1c4] ss:$24 sps:$4 sm:$0xff]  }
 0x121   : > { %2337 = vmatmul.mubr.bf16.vlgmr.msra.gmra.mxu1 %v3878_v58  ;;  %2347 = vmatprep.subr.bf16.mxu0 %v3307_v10  ;;  %v3380_v10 = vld [vmem:[#allocation7 + $0x4f0] ss:$24 sps:$4 sm:$0xff]  }
 0x122   : > { %2387 = vmatpush1.bf16.msra.mxu1 %v3302_v11  ;;  %2418 = vmatprep.mubr.bf16.mxu1 %v3858_v30  ;;  %v3323_v30 = vld [vmem:[#allocation7 + $0xa0] ss:$24 sps:$4 sm:$0xff]   ;;  %v3388_v11 = vld [vmem:[#allocation7 + $0x4c4] ss:$24 sps:$4 sm:$0xff]  }
 0x123   : > { %2388 = vmatprep.subr.bf16.mxu1 %v3310_v12  ;;  %v3383_v12 = vld [vmem:[#allocation7 + $0x1c0] ss:$24 sps:$4 sm:$0xff]  }
 0x124   : > { %2348 = vmatpush1.bf16.msra.mxu0 %v3305_v13  ;;  %v3391_v13 = vld [vmem:[#allocation7 + $0x194] ss:$24 sps:$4 sm:$0xff]  }
 0x125   : > { %2349 = vmatprep.subr.bf16.mxu0 %v3313_v15  ;;  %v3386_v15 = vld [vmem:[#allocation7 + $0x4c0] ss:$24 sps:$4 sm:$0xff]  }
 0x126   : > { %2389 = vmatpush1.bf16.msra.mxu1 %v3308_v16  ;;  %v3394_v16 = vld [vmem:[#allocation7 + $0x494] ss:$24 sps:$4 sm:$0xff]  }
 0x127   : > { %2390 = vmatprep.subr.bf16.mxu1 %v3316_v17  ;;  %v3389_v17 = vld [vmem:[#allocation7 + $0x190] ss:$24 sps:$4 sm:$0xff]  }
 0x128   : > { %2350 = vmatpush1.bf16.msra.mxu0 %v3311_v18  ;;  %v3397_v18 = vld [vmem:[#allocation7 + $0x764] ss:$24 sps:$4 sm:$0xff]  }
 0x129   : > { %2351 = vmatprep.subr.bf16.mxu0 %v3319_v19  ;;  %v3392_v19 = vld [vmem:[#allocation7 + $0x490] ss:$24 sps:$4 sm:$0xff]  }
 0x12a   : > { %2391 = vmatpush1.bf16.msra.mxu1 %v3314_v20  ;;  %v3395_v20 = vld [vmem:[#allocation7 + $0x760] ss:$24 sps:$4 sm:$0xff]  }
 0x12b   : > { %2392 = vmatprep.subr.bf16.mxu1 %v3322_v21  ;;  %v3400_v21 = vld [vmem:[#allocation7 + $0x734] ss:$24 sps:$4 sm:$0xff]  }
 0x12c   : > { %2352 = vmatpush1.bf16.msra.mxu0 %v3317_v23 }
 0x12d   : > { %2353 = vmatprep.subr.bf16.mxu0 %v3325_v22  ;;  %v3398_v22 = vld [vmem:[#allocation7 + $0x730] ss:$24 sps:$4 sm:$0xff]  }
 0x12e   : > { %2393 = vmatpush1.bf16.msra.mxu1 %v3320_v24 }
 0x12f   : > { %2394 = vmatprep.subr.bf16.mxu1 %v3328_v25 }
 0x130   : > { %2354 = vmatpush1.bf16.msra.mxu0 %v3323_v30  ;;  %v3403_v30 = vld [vmem:[#allocation7 + $0x704] ss:$24 sps:$4 sm:$0xff]  }
 0x131   : > { %2355 = vmatprep.subr.bf16.mxu0 %v3331_v28 }
 0x132   : > { %2395 = vmatpush1.bf16.msra.mxu1 %v3326_v29 }
 0x133   : > { %2396 = vmatprep.subr.bf16.mxu1 %v3334_v32  ;;  %v3401_v32 = vld [vmem:[#allocation7 + $0x700] ss:$24 sps:$4 sm:$0xff]  }
 0x134   : > { %2356 = vmatpush1.bf16.msra.mxu0 %v3329_v33 }
 0x135   : > { %2357 = vmatprep.subr.bf16.mxu0 %v3337_v52 }
 0x136   : > { %2397 = vmatpush1.bf16.msra.mxu1 %v3332_v34 }
 0x137   : > { %2398 = vmatprep.subr.bf16.mxu1 %v3340_v35  ;;  %v3409_v35 = vld [vmem:[#allocation7 + $0x6a4] ss:$24 sps:$4 sm:$0xff]  }
 0x138   : > { %2358 = vmatpush1.bf16.msra.mxu0 %v3335_v36  ;;  %v3407_v36 = vld [vmem:[#allocation7 + $0x6a0] ss:$24 sps:$4 sm:$0xff]  }
 0x139   : > { %2359 = vmatprep.subr.bf16.mxu0 %v3343_v37  ;;  %v3410_v37 = vld [vmem:[#allocation7 + $0x670] ss:$24 sps:$4 sm:$0xff]  }
 0x13a   : > { %2399 = vmatpush1.bf16.msra.mxu1 %v3338_v38  ;;  %v3415_v38 = vld [vmem:[#allocation7 + $0x644] ss:$24 sps:$4 sm:$0xff]  }
 0x13b   : > { %2400 = vmatprep.subr.bf16.mxu1 %v3346_v39  ;;  %v3413_v39 = vld [vmem:[#allocation7 + $0x640] ss:$24 sps:$4 sm:$0xff]  }
 0x13c   : > { %2360 = vmatpush1.bf16.msra.mxu0 %v3341_v41  ;;  %v3418_v41 = vld [vmem:[#allocation7 + $0x614] ss:$24 sps:$4 sm:$0xff]  }
 0x13d   : > { %2361 = vmatprep.subr.bf16.mxu0 %v3349_v42  ;;  %v3416_v42 = vld [vmem:[#allocation7 + $0x610] ss:$24 sps:$4 sm:$0xff]  }
 0x13e   : > { %2401 = vmatpush1.bf16.msra.mxu1 %v3344_v43  ;;  %v3421_v43 = vld [vmem:[#allocation7 + $0x8e4] ss:$24 sps:$4 sm:$0xff]  }
 0x13f   : > { %2402 = vmatprep.subr.bf16.mxu1 %v3352_v44  ;;  %v3419_v44 = vld [vmem:[#allocation7 + $0x8e0] ss:$24 sps:$4 sm:$0xff]  }
 0x140   : > { %2362 = vmatpush2.bf16.msra.mxu0 %v3347_v47  ;;  %v3424_v47 = vld [vmem:[#allocation7 + $0x8b4] ss:$24 sps:$4 sm:$0xff]  }
 0x141   : > { %2363 = vmatprep.subr.bf16.mxu0 %v3355_v50  ;;  %v3422_v50 = vld [vmem:[#allocation7 + $0x8b0] ss:$24 sps:$4 sm:$0xff]  }
 0x142   : > { %2403 = vmatpush2.bf16.msra.mxu1 %v3350_v51  ;;  %v3427_v51 = vld [vmem:[#allocation7 + $0x884] ss:$24 sps:$4 sm:$0xff]  }
 0x143   : > { %2404 = vmatprep.subr.bf16.mxu1 %v3358_v53  ;;  %v3425_v53 = vld [vmem:[#allocation7 + $0x880] ss:$24 sps:$4 sm:$0xff]  }
 0x144   : > { %2364 = vmatpush2.bf16.msra.mxu0 %v3353_v54  ;;  %v3430_v54 = vld [vmem:[#allocation7 + $0x854] ss:$24 sps:$4 sm:$0xff]  }
 0x145   : > { %2365 = vmatprep.subr.bf16.mxu0 %v3361_v55  ;;  %v3428_v55 = vld [vmem:[#allocation7 + $0x850] ss:$24 sps:$4 sm:$0xff]  }
 0x146   : > { %2405 = vmatpush2.bf16.msra.mxu1 %v3356_v57  ;;  %v3433_v57 = vld [vmem:[#allocation7 + $0x824] ss:$24 sps:$4 sm:$0xff]  }
 0x147   : > { %2406 = vmatprep.subr.bf16.mxu1 %v3364_v59  ;;  %v3431_v59 = vld [vmem:[#allocation7 + $0x820] ss:$24 sps:$4 sm:$0xff]  }
 0x148   : > { %2366 = vmatpush2.bf16.msra.mxu0 %v3359_v60  ;;  %v3436_v60 = vld [vmem:[#allocation7 + $0x7f4] ss:$24 sps:$4 sm:$0xff]  }
 0x149   : > { %2367 = vmatprep.subr.bf16.mxu0 %v3367_v61  ;;  %v3434_v61 = vld [vmem:[#allocation7 + $0x7f0] ss:$24 sps:$4 sm:$0xff]  }
 0x14a   : > { %2407 = vmatpush2.bf16.msra.mxu1 %v3362_v62  ;;  %v3439_v62 = vld [vmem:[#allocation7 + $0x7c4] ss:$24 sps:$4 sm:$0xff]  }
 0x14b   : > { %2408 = vmatprep.subr.bf16.mxu1 %v3370_v63  ;;  %v627_v63 = vld [vmem:[#allocation8] sm:$0x3f] }
 0x14c   : > { %2368 = vmatpush2.bf16.msra.mxu0 %v3365_v0  ;;  %v3437_v0 = vld [vmem:[#allocation7 + $0x7c0] ss:$24 sps:$4 sm:$0xff]  }
 0x14d   : > { %2369 = vmatprep.subr.bf16.mxu0 %v3373_v1  ;;  %v3442_v1 = vld [vmem:[#allocation7 + $0x794] ss:$24 sps:$4 sm:$0xff]  }
 0x14e   : > { %2409 = vmatpush2.bf16.msra.mxu1 %v3368_v2  ;;  %v632_v2 = vrot.slane %v627_v63, %v293_v46 }
 0x14f   : > { %2410 = vmatprep.subr.bf16.mxu1 %v3376_v3  ;;  %v636_v3 = vrot.slane %v627_v63, %v297_v45 }
 0x150   : > { %2370 = vmatpush2.bf16.msra.mxu0 %v3371_v4  ;;  %v3440_v4 = vld [vmem:[#allocation7 + $0x790] ss:$24 sps:$4 sm:$0xff]  }
 0x151   : > { %2371 = vmatprep.subr.bf16.mxu0 %v3379_v5 }
 0x152   : > { %2411 = vmatpush2.bf16.msra.mxu1 %v3374_v6 }
 0x153   : > { %2412 = vmatprep.subr.bf16.mxu1 %v3382_v7 }
 0x154   : > { %2372 = vmatpush2.bf16.msra.mxu0 %v3377_v8 }
 0x155   : > { %2373 = vmatprep.subr.bf16.mxu0 %v3385_v9 }
 0x156   : > { %2413 = vmatpush2.bf16.msra.mxu1 %v3380_v10 }
 0x157   : > { %2414 = vmatprep.subr.bf16.mxu1 %v3388_v11 }
 0x158   : > { %2374 = vmatpush2.bf16.msra.mxu0 %v3383_v12 }
 0x159   : > { %2375 = vmatprep.subr.bf16.mxu0 %v3391_v13 }
 0x15a   : > { %2415 = vmatpush2.bf16.msra.mxu1 %v3386_v15 }
 0x15b   : > { %2416 = vmatprep.subr.bf16.mxu1 %v3394_v16 }
 0x15c   : > { %2376 = vmatpush2.bf16.msra.mxu0 %v3389_v17 }
 0x15d   : > { %2427 = vmatprep.subr.bf16.mxu0 %v3397_v18  ;;  %v644_v18 = vrot.slane %v627_v63, %v305_v48 }
 0x15e   : > { %2417 = vmatpush2.bf16.msra.mxu1 %v3392_v19 }
 0x15f   : > { %v3888_v23 = vpop.f32.mrf.mxu0  ;;  %2378 = vmatmul.mubr.bf16.vlgmr.msra.gmra.mxu0 %v3855_v26  ;;  %v3406_v26 = vld [vmem:[#allocation7 + $0x6d4] ss:$24 sps:$4 sm:$0xff]  }
 0x160   : > { %2428 = vmatpush1.bf16.msra.mxu0 %v3395_v20  ;;  %2459 = vmatprep.mubr.bf16.mxu0 %v3875_v27  ;;  %v3894_v25 = vpop.f32.mrf.mxu1  ;;  %v3404_v27 = vld [vmem:[#allocation7 + $0x6d0] ss:$24 sps:$4 sm:$0xff]   ;;  %v2134_v5 = vadd.f32 %v3888_v23, %v632_v2 }
 0x161   : > { %v3892_v24 = vpop.f32.mrf.mxu0  ;;  %2419 = vmatmul.mubr.bf16.vlgmr.msra.gmra.mxu1 %v3860_v31  ;;  %2429 = vmatprep.subr.bf16.mxu0 %v3400_v21  ;;  %v3412_v31 = vld [vmem:[#allocation7 + $0x674] ss:$24 sps:$4 sm:$0xff]  }
 0x162   : > { %v3897_v29 = vpop.f32.mrf.mxu1  ;;  %v2136_v6 = vadd.f32 %v3892_v24, %v636_v3  ;;  %v2175_v7 = vadd.f32 %v3894_v25, %v2134_v5 }
 0x163   : > { %v2137_v28 = vpop.f32.mrf.mxu0 }
 0x164   : > { %2430 = vmatpush1.bf16.msra.mxu0 %v3398_v22  ;;  %v2178_v52 = vpop.f32.mrf.mxu1  ;;  %v2177_v9 = vadd.f32 %v3897_v29, %v2136_v6 }
 0x165   : > { %v2138_v33 = vpop.f32.mrf.mxu0  ;;  %2431 = vmatprep.subr.bf16.mxu0 %v3403_v30 }
 0x166   : > { %v2179_v34 = vpop.f32.mrf.mxu1 }
 0x168   : > { %2432 = vmatpush1.bf16.msra.mxu0 %v3401_v32 }
 0x169   : > { %2433 = vmatprep.subr.bf16.mxu0 %v3406_v26 }
 0x16c   : > { %2434 = vmatpush1.bf16.msra.mxu0 %v3404_v27 }
 0x16d   : > { %2435 = vmatprep.subr.bf16.mxu0 %v3409_v35 }
 0x170   : > { %2436 = vmatpush1.bf16.msra.mxu0 %v3407_v36 }
 0x171   : > { %2437 = vmatprep.subr.bf16.mxu0 %v3412_v31 }
 0x174   : > { %2438 = vmatpush1.bf16.msra.mxu0 %v3410_v37 }
 0x175   : > { %2439 = vmatprep.subr.bf16.mxu0 %v3415_v38  ;;  %v648_v38 = vrot.slane %v627_v63, %v309_v14 }
 0x178   : > { %2440 = vmatpush1.bf16.msra.mxu0 %v3413_v39  ;;  %v652_v39 = vrot.slane %v627_v63, %v313_v56 }
 0x179   : > { %2441 = vmatprep.subr.bf16.mxu0 %v3418_v41 }
 0x17c   : > { %2442 = vmatpush1.bf16.msra.mxu0 %v3416_v42 }
 0x17d   : > { %2443 = vmatprep.subr.bf16.mxu0 %v3421_v43 }
 0x180   : > { %2444 = vmatpush2.bf16.msra.mxu0 %v3419_v44 }
 0x181   : > { %2445 = vmatprep.subr.bf16.mxu0 %v3424_v47 }
 0x184   : > { %2446 = vmatpush2.bf16.msra.mxu0 %v3422_v50 }
 0x185   : > { %2447 = vmatprep.subr.bf16.mxu0 %v3427_v51 }
 0x188   : > { %2448 = vmatpush2.bf16.msra.mxu0 %v3425_v53 }
 0x189   : > { %2449 = vmatprep.subr.bf16.mxu0 %v3430_v54 }
 0x18c   : > { %2450 = vmatpush2.bf16.msra.mxu0 %v3428_v55 }
 0x18d   : > { %2451 = vmatprep.subr.bf16.mxu0 %v3433_v57 }
 0x190   : > { %2452 = vmatpush2.bf16.msra.mxu0 %v3431_v59 }
 0x191   : > { %2453 = vmatprep.subr.bf16.mxu0 %v3436_v60 }
 0x194   : > { %2454 = vmatpush2.bf16.msra.mxu0 %v3434_v61 }
 0x195   : > { %2455 = vmatprep.subr.bf16.mxu0 %v3439_v62 }
 0x198   : > { %2456 = vmatpush2.bf16.msra.mxu0 %v3437_v0 }
 0x199   : > { %2457 = vmatprep.subr.bf16.mxu0 %v3442_v1 }
 0x19c   : > { %2458 = vmatpush2.bf16.msra.mxu0 %v3440_v4 }
 0x19f   : > { %v2215_v8 = vpop.f32.mrf.mxu0  ;;  %2460 = vmatmul.mubr.bf16.vlgmr.msra.gmra.mxu0 %v3878_v58  ;;  %v640_v58 = vrot.slane %v627_v63, %v301_v49 }
 0x1a0   : > { %v2216_v46 = vadd.f32 %v2215_v8, %v2175_v7 }
 0x1a1   : > { %v2217_v10 = vpop.f32.mrf.mxu0  ;;  %v2256_v11 = vpop.f32.mrf.mxu1 }
 0x1a2   : > { %2468 = vst [vmem:[%s3909_s13] sm:$0xff] %v2216_v46  ;;  %v2218_v45 = vadd.f32 %v2217_v10, %v2177_v9  ;;  %v2257_v19 = vadd.f32 %v2256_v11, %v640_v58 }
 0x1a3   : > { %v2219_v12 = vpop.f32.mrf.mxu0  ;;  %v2258_v13 = vpop.f32.mrf.mxu1 }
 0x1a4   : > { %2469 = vst [vmem:[%s3909_s13 + $0x8] sm:$0xff] %v2218_v45  ;;  %v2259_v20 = vadd.f32 %v2258_v13, %v644_v18 }
 0x1a5   : > { %v2220_v15 = vpop.f32.mrf.mxu0  ;;  %v2260_v16 = vpop.f32.mrf.mxu1 }
 0x1a7   : > { %v2261_v17 = vpop.f32.mrf.mxu1 }
 0x1df   : > { %v2297_v21 = vpop.f32.mrf.mxu0 }
 0x1e0   : > { %v2298_v23 = vadd.f32 %v2297_v21, %v2257_v19 }
 0x1e1   : > { %v2299_v22 = vpop.f32.mrf.mxu0  ;;  %v2338_v24 = vpop.f32.mrf.mxu1 }
 0x1e2   : > { %v2300_v25 = vadd.f32 %v2299_v22, %v2259_v20  ;;  %v2339_v30 = vadd.f32 %v2338_v24, %v2298_v23 }
 0x1e3   : > { %v2301_v28 = vpop.f32.mrf.mxu0  ;;  %v2340_v29 = vpop.f32.mrf.mxu1 }
 0x1e4   : > { %2470 = vst [vmem:[%s3909_s13 + $0x10] sm:$0xff] %v2339_v30  ;;  %v2341_v32 = vadd.f32 %v2340_v29, %v2300_v25 }
 0x1e5   : > { %v2302_v33 = vpop.f32.mrf.mxu0  ;;  %v2342_v26 = vpop.f32.mrf.mxu1 }
 0x1e6   : > { %2471 = vst [vmem:[%s3909_s13 + $0x18] sm:$0xff] %v2341_v32 }
 0x1e7   : > { %v2343_v49 = vpop.f32.mrf.mxu1 }
 0x21f   : > { %v2379_v52 = vpop.f32.mrf.mxu0 }
 0x220   : > { %v2380_v41 = vadd.f32 %v2379_v52, %v648_v38 }
 0x221   : > { %v2381_v48 = vpop.f32.mrf.mxu0  ;;  %v2420_v34 = vpop.f32.mrf.mxu1 }
 0x222   : > { %v2382_v42 = vadd.f32 %v2381_v48, %v652_v39  ;;  %v2421_v43 = vadd.f32 %v2420_v34, %v2380_v41 }
 0x223   : > { %v2383_v27 = vpop.f32.mrf.mxu0  ;;  %v2422_v35 = vpop.f32.mrf.mxu1 }
 0x224   : > { %v2423_v47 = vadd.f32 %v2422_v35, %v2382_v42 }
 0x225   : > { %v2384_v36 = vpop.f32.mrf.mxu0  ;;  %v2424_v31 = vpop.f32.mrf.mxu1 }
 0x227   : > { %v2425_v37 = vpop.f32.mrf.mxu1 }
 0x25f   : > { %v2461_v44 = vpop.f32.mrf.mxu0 }
 0x260   : > { %v2462_v50 = vadd.f32 %v2461_v44, %v2421_v43 }
 0x261   : > { %v2463_v51 = vpop.f32.mrf.mxu0 }
 0x262   : > { %2472 = vst [vmem:[%s3909_s13 + $0x20] sm:$0xff] %v2462_v50  ;;  %v2464_v53 = vadd.f32 %v2463_v51, %v2423_v47 }
 0x263   : > { %v2465_v40 = vpop.f32.mrf.mxu0 }
 0x264   : > { %2473 = vst [vmem:[%s3909_s13 + $0x28] sm:$0xff] %v2464_v53 }
 0x265   : > { %v2466_v56 = vpop.f32.mrf.mxu0 }
 0x266   : > { %3574 = shalt.err (!%p3571_p2)
}
 0x267   : > { %s3575_s11 = scalar_lea.hbm %s3929_s29, 768  ;;  %s3579_s2 = scalar_lea.hbm %s3982_s4, 1536 }
 0x268   : > { %p3576_p8 = scmp.ne.s32.totalorder %s3929_s29, %s3575_s11  ;;  %p3580_p10 = scmp.lt.s32.totalorder %s3929_s29, %s3982_s4 }
 0x269   : > { %p3581_p0 = scmp.lt.s32.totalorder %s3579_s2, %s3575_s11 }
 0x26a   : > { %p3577_p12 = pnand %p3576_p8, %p3783_p13 }
 0x26b   : > { %p3582_p9 = por %p3581_p0, %p3580_p10 }
 0x26c   : > { %p3578_p7 = pneg %p3577_p12 }
 0x26e   : > { %p3583_p1 = pnand %p3582_p9, %p3578_p7 }
 0x270   : > { %3586 = shalt.err (!%p3583_p1)
}
 0x271   : > { %2930 = dma.vmem_to_hbm [thread:$0]  (%p3783_p13), %s3931_s21, 768, %s3929_s29, %s2475_s18  }
 0x272 PF: > { %s2503_s27 = sand.u32 1, %s3629_s15   ;;  %p4003_p11 = scmp.ne.s32.totalorder %s3992_s26, 0 }
 0x273   : > { %p4004_p6 = scmp.ge.s32.totalorder %s3649_s20, 2  ;;  %s2504_s12 = scalar_lea.sflag [#allocation4], %s2503_s27 }
 0x275   : > { %p2947_p3 = pnand %p4004_p6, %p4003_p11 }
 0x277   : > { %p2948_p5 = pneg %p2947_p3 }
 0x279   : > { %3624 = dma.done.wait (%p2948_p5), %s2504_s12, 768  }
 0x27a   : > { %3626 = vsyncadd (%p2948_p5), %s2504_s12, 4294966528  ;;  %s22_s20 = sadd.s32 1, %s3649_s20   ;;  %s4005_s15 = smov %s3633_s16 }
 0x27b   : > { %p19_p4 = scmp.ge.s32.totalorder %s22_s20, 4   ;;  %s4006_s16 = smov %s3637_s17 }
 0x27c   : > { %s4007_s17 = smov %s3799_s24  ;;  %s4008_s18 = smov %s3645_s19 }
 0x27d   : > { %s4009_s19 = smov %s4011_s7  ;;  %21 = sbr.rel (!%p19_p4) target bundleno = 11 (0xb), region = 94 }
 0x282   :  { %2509 = vsyncpa [#allocation3], 1 }
 0x283   :  { %2511 = vsyncpa [#allocation3 + $0x1], 1 }
 0x284   :  { %2512 = vsyncpa [#allocation6], 1 }
 0x285   :  { %2513 = vsyncpa [#allocation9], 1 }
 0x286   :  { %2514 = vsyncpa [#allocation4], 1 }
 0x287   :  { %2516 = vsyncpa [#allocation4 + $0x1], 1 }

</bundles_post_ra>
